<compile_context>
chip_gen: v5e
topology: v5e:2x2
jax: 0.10.0
libtpu: 0.0.40
codegen_flags: <defaults>
</compile_context>

<pallas_src>
import jax
import jax.numpy as jnp
import numpy as np
from jax.experimental import pallas as pl
from jax.experimental.pallas import tpu as pltpu


def attn_lstm_kernel(xx_ref, w2_ref, whh_ref, b2_ref,
                     wa_ref, ba_ref, wc_ref, bc_ref, pool_ref,
                     out_ref,
                     pre_ref):
    R = 8                               # sublane-aligned rows per timestep (>= B)
    SP = xx_ref.shape[0]                # S * R
    S = SP // R
    H2 = whh_ref.shape[0]               # 2H
    H = H2 // 2

    # ---- 1) hoisted input projection: both directions, all timesteps, one matmul ----
    # xx row t*R+b = [x[t,b] | x[S-1-t,b]] (rows b>=B are zero padding); w2 is block
    # structured so output columns are interleaved [i_f,i_b | f_f,f_b | o_f,o_b | g_f,g_b]
    # and the g columns are pre-scaled by 2 (tanh(x) = 2*sigmoid(2x) - 1).
    pre_ref[...] = (
        jnp.dot(xx_ref[...], w2_ref[...], preferred_element_type=jnp.float32)
        + b2_ref[...])

    # ---- 2) fused bidirectional recurrence, fully unrolled, register-resident h ----
    whh = whh_ref[...]                                  # (2H, 8H) block-diagonal
    h = jnp.zeros((R, H2), jnp.float32)                 # [h_fwd | h_bwd]
    c = jnp.zeros((R, H2), jnp.float32)
    hs = []
    for t in range(S):                                  # S is static -> fully unrolled
        gates = (jnp.dot(h, whh, preferred_element_type=jnp.float32)
                 + pre_ref[pl.ds(t * R, R), :])         # 8-aligned full-width read
        sig = jax.nn.sigmoid(gates)                     # one full-width EUP pass
        i_g = sig[:, 0:2 * H]
        f_g = sig[:, 2 * H:4 * H]
        o_g = sig[:, 4 * H:6 * H]
        g_g = 2.0 * sig[:, 6 * H:8 * H] - 1.0           # tanh via 2*sigmoid(2x)-1
        c = f_g * c + i_g * g_g
        h = o_g * jnp.tanh(c)
        hs.append(h)                                    # keep h in vregs, no stores

    # ---- 3) assemble lstm_out (S*R, 2H) in-register ----
    # forward half in time order; backward half computed at iteration t is time S-1-t,
    # so the reversed list gives time order.
    h_fwd = jnp.concatenate(hs, axis=0)                 # (S*R, 2H)
    h_bwd = jnp.concatenate(hs[::-1], axis=0)           # (S*R, 2H)
    hid = jnp.concatenate([h_fwd[:, 0:H], h_bwd[:, H:2 * H]], axis=1)   # (S*R, 2H)

    # ---- 4) attention MLP for all timesteps at once ----
    attn = jnp.tanh(
        jnp.dot(hid, wa_ref[...], preferred_element_type=jnp.float32)
        + ba_ref[...])                                  # (S*R, H)
    # context Linear (H -> 1) as VPU multiply + lane-axis sum.
    logits = jnp.sum(attn * wc_ref[...], axis=-1, keepdims=True) + bc_ref[...]

    # ---- 5) softmax over the sequence + weighted pooling (one fused matmul) ----
    # Subtracting the global max (over all rows, incl. bounded padding rows) is an
    # exact constant shift per batch; logits are tanh-bounded so this is benign.
    m = jnp.max(logits, axis=0, keepdims=True)          # (1, 1)
    e = jnp.exp(logits - m)                             # (S*R, 1)
    cat = jnp.concatenate([e * hid, jnp.broadcast_to(e, hid.shape)], axis=1)  # (S*R, 4H)
    pooled = jnp.dot(pool_ref[...], cat, preferred_element_type=jnp.float32)  # (B, 4H)
    num = pooled[:, 0:2 * H]
    den = pooled[:, 2 * H:2 * H + 1]
    out_ref[...] = num * pl.reciprocal(den, approx=True)


def pack_params(params, E, H):
    """Repack natural PyTorch-style weights into the fused/interleaved kernel layout.

    g-gate columns of W_ih / W_hh / bias are pre-scaled by 2 so the kernel can use a
    single full-width sigmoid and recover tanh as 2*sigmoid(2x)-1.
    """
    def split_gates(w):  # natural gate order along last axis is [i, f, g, o]
        return w[..., 0:H], w[..., H:2 * H], w[..., 2 * H:3 * H], w[..., 3 * H:4 * H]

    zE = jnp.zeros((E, H), jnp.float32)
    zH = jnp.zeros((H, H), jnp.float32)

    i_f, f_f, g_f, o_f = split_gates(params["wih_f"])
    i_b, f_b, g_b, o_b = split_gates(params["wih_b"])
    w2_top = jnp.concatenate([i_f, zE, f_f, zE, o_f, zE, 2.0 * g_f, zE], axis=1)
    w2_bot = jnp.concatenate([zE, i_b, zE, f_b, zE, o_b, zE, 2.0 * g_b], axis=1)
    w2 = jnp.concatenate([w2_top, w2_bot], axis=0)            # (2E, 8H)

    ri_f, rf_f, rg_f, ro_f = split_gates(params["whh_f"])
    ri_b, rf_b, rg_b, ro_b = split_gates(params["whh_b"])
    whh_top = jnp.concatenate([ri_f, zH, rf_f, zH, ro_f, zH, 2.0 * rg_f, zH], axis=1)
    whh_bot = jnp.concatenate([zH, ri_b, zH, rf_b, zH, ro_b, zH, 2.0 * rg_b], axis=1)
    whh2 = jnp.concatenate([whh_top, whh_bot], axis=0)        # (2H, 8H) block-diagonal

    bi_f, bf_f, bg_f, bo_f = split_gates(params["b_f"])
    bi_b, bf_b, bg_b, bo_b = split_gates(params["b_b"])
    b2 = jnp.concatenate([bi_f, bi_b, bf_f, bf_b, bo_f, bo_b,
                          2.0 * bg_f, 2.0 * bg_b], axis=1)    # (1, 8H)

    wa = jnp.concatenate([params["wa_f"], params["wa_b"]], axis=0)   # (2H, H)
    wc_row = params["wc"].T                                   # (1, H)
    return (w2, whh2, b2, wa, params["b_a"], wc_row, params["b_c"])


def make_attn_lstm(params, S, B, E, H):
    """Pack weights / build constants once; return a jitted forward(x)."""
    assert B <= 8, "padding scheme assumes batch <= 8"
    R = 8

    packed = pack_params(params, E, H)            # hoisted out of the per-call path

    pool_np = np.zeros((B, S * R), np.float32)    # pool[b, t*R+b] = 1 (select batch b)
    for b in range(B):
        pool_np[b, b::R] = 1.0
    consts = tuple(jnp.asarray(a, jnp.float32) for a in packed) + (
        jnp.asarray(pool_np),)

    def _full_spec(shape):
        nd = len(shape)
        return pl.BlockSpec(shape, lambda i, nd=nd: (0,) * nd)

    in_shapes = ((S * R, 2 * E),) + tuple(a.shape for a in consts)
    grid_spec = pltpu.PrefetchScalarGridSpec(
        num_scalar_prefetch=0,
        grid=(1,),
        in_specs=[_full_spec(s) for s in in_shapes],
        out_specs=_full_spec((B, 2 * H)),
        scratch_shapes=[
            pltpu.VMEM((S * R, 8 * H), jnp.float32),   # padded, 8-aligned pre-gates
        ])

    kernel_call = pl.pallas_call(
        attn_lstm_kernel,
        out_shape=jax.ShapeDtypeStruct((B, 2 * H), jnp.float32),
        grid_spec=grid_spec,
        compiler_params=pltpu.CompilerParams(
            dimension_semantics=("arbitrary",)))

    @jax.jit
    def forward(x):
        # Row t*R+b holds [x[t, b] | x[S-1-t, b]]; rows b>=B are zero (layout only).
        xx = jnp.concatenate([x, jnp.flip(x, axis=0)], axis=-1)     # (S, B, 2E)
        xx_pad = jnp.zeros((S, R, 2 * E), jnp.float32).at[:, :B, :].set(xx)
        xx_pad = xx_pad.reshape(S * R, 2 * E)
        return kernel_call(xx_pad, *consts)

    return forward


def init_params(key, E, H):
    k = 1.0 / np.sqrt(H)
    keys = jax.random.split(key, 11)
    u = lambda kk, shape: jax.random.uniform(kk, shape, jnp.float32, -k, k)
    return dict(
        wih_f=u(keys[0], (E, 4 * H)),     # W_ih^T, forward direction, gates [i,f,g,o]
        whh_f=u(keys[1], (H, 4 * H)),     # W_hh^T, forward direction
        b_f=u(keys[2], (1, 4 * H)),       # combined (b_ih + b_hh), forward
        wih_b=u(keys[3], (E, 4 * H)),     # reverse direction
        whh_b=u(keys[4], (H, 4 * H)),
        b_b=u(keys[5], (1, 4 * H)),
        wa_f=u(keys[6], (H, H)),          # attnLinear^T rows for fwd half of lstm_out
        wa_b=u(keys[7], (H, H)),          # attnLinear^T rows for bwd half of lstm_out
        b_a=u(keys[8], (1, H)),
        wc=u(keys[9], (H, 1)),            # context Linear (H -> 1)
        b_c=u(keys[10], (1, 1)),
    )


def reference(x, p):
    """Pure-JAX reference mirroring the PyTorch forward exactly."""
    S, B, E = x.shape
    H = p["whh_f"].shape[0]

    def run_dir(wih, whh, b, reverse):
        h = jnp.zeros((B, H), jnp.float32)
        c = jnp.zeros((B, H), jnp.float32)
        outs = [None] * S
        order = range(S - 1, -1, -1) if reverse else range(S)
        for t in order:
            gates = x[t] @ wih + h @ whh + b
            i_g = jax.nn.sigmoid(gates[:, 0 * H:1 * H])
            f_g = jax.nn.sigmoid(gates[:, 1 * H:2 * H])
            g_g = jnp.tanh(gates[:, 2 * H:3 * H])
            o_g = jax.nn.sigmoid(gates[:, 3 * H:4 * H])
            c = f_g * c + i_g * g_g
            h = o_g * jnp.tanh(c)
            outs[t] = h
        return jnp.stack(outs, axis=0)

    hf = run_dir(p["wih_f"], p["whh_f"], p["b_f"], False)
    hb = run_dir(p["wih_b"], p["whh_b"], p["b_b"], True)
    lstm_out = jnp.concatenate([hf, hb], axis=-1)              # (S, B, 2H)
    wa = jnp.concatenate([p["wa_f"], p["wa_b"]], axis=0)       # (2H, H)
    attn = jnp.tanh(lstm_out @ wa + p["b_a"])                  # (S, B, H)
    logits = attn @ p["wc"] + p["b_c"]                         # (S, B, 1)
    score = jax.nn.softmax(logits, axis=0)                     # softmax over seq
    a = jnp.einsum("sbk,sb->bk", lstm_out, score[..., 0])      # (B, 2H)
    return a


if __name__ == "__main__":
    S, B, E, H = 8, 2, 64, 32     # seq, batch, embedding_dim, hidden_dim
    key = jax.random.PRNGKey(0)
    kx, kp = jax.random.split(key)
    x = jax.random.normal(kx, (S, B, E), jnp.float32)
    params = init_params(kp, E, H)

    forward = make_attn_lstm(params, S, B, E, H)
    out = jax.block_until_ready(forward(x))

    ref = reference(x, params)
    assert out.shape == (B, 2 * H)
    np.testing.assert_allclose(np.asarray(out), np.asarray(ref),
                               rtol=2e-3, atol=2e-3)
    print("KERNEL_OK")
</pallas_src>

<mosaic_0001>
module attributes {stable_mosaic.version = 11 : i64} {
  func.func @attn_lstm_kernel(%arg0: i32, %arg1: memref<64x128xf32, #tpu.memory_space<vmem>>, %arg2: memref<128x256xf32, #tpu.memory_space<vmem>>, %arg3: memref<64x256xf32, #tpu.memory_space<vmem>>, %arg4: memref<1x256xf32, #tpu.memory_space<vmem>>, %arg5: memref<64x32xf32, #tpu.memory_space<vmem>>, %arg6: memref<1x32xf32, #tpu.memory_space<vmem>>, %arg7: memref<1x32xf32, #tpu.memory_space<vmem>>, %arg8: memref<1x1xf32, #tpu.memory_space<vmem>>, %arg9: memref<2x64xf32, #tpu.memory_space<vmem>>, %arg10: memref<2x64xf32, #tpu.memory_space<vmem>>, %arg11: memref<64x256xf32, #tpu.memory_space<vmem>>) attributes {dimension_semantics = [#tpu.dimension_semantics<arbitrary>], iteration_bounds = array<i64: 1>, scalar_prefetch = 0 : i64, scratch_operands = 1 : i64, tpu.core_type = #tpu.core_type<tc>, window_params = [{pipeline_mode = #tpu.pipeline_mode<synchronous>, transform_indices = @transform_0, window_bounds = array<i64: 64, 128>}, {pipeline_mode = #tpu.pipeline_mode<synchronous>, transform_indices = @transform_1, window_bounds = array<i64: 128, 256>}, {pipeline_mode = #tpu.pipeline_mode<synchronous>, transform_indices = @transform_2, window_bounds = array<i64: 64, 256>}, {pipeline_mode = #tpu.pipeline_mode<synchronous>, transform_indices = @transform_3, window_bounds = array<i64: 1, 256>}, {pipeline_mode = #tpu.pipeline_mode<synchronous>, transform_indices = @transform_4, window_bounds = array<i64: 64, 32>}, {pipeline_mode = #tpu.pipeline_mode<synchronous>, transform_indices = @transform_5, window_bounds = array<i64: 1, 32>}, {pipeline_mode = #tpu.pipeline_mode<synchronous>, transform_indices = @transform_6, window_bounds = array<i64: 1, 32>}, {pipeline_mode = #tpu.pipeline_mode<synchronous>, transform_indices = @transform_7, window_bounds = array<i64: 1, 1>}, {pipeline_mode = #tpu.pipeline_mode<synchronous>, transform_indices = @transform_8, window_bounds = array<i64: 2, 64>}, {pipeline_mode = #tpu.pipeline_mode<synchronous>, transform_indices = @transform_9, window_bounds = array<i64: 2, 64>}]} {
    %c0 = arith.constant 0 : index
    %c0_0 = arith.constant 0 : index
    %0 = vector.load %arg1[%c0, %c0_0] : memref<64x128xf32, #tpu.memory_space<vmem>>, vector<64x128xf32>
    %c0_1 = arith.constant 0 : index
    %c0_2 = arith.constant 0 : index
    %1 = vector.load %arg2[%c0_1, %c0_2] : memref<128x256xf32, #tpu.memory_space<vmem>>, vector<128x256xf32>
    %cst = arith.constant dense<0.000000e+00> : vector<64x256xf32>
    %2 = tpu.matmul %0, %1, %cst {dimension_numbers = #tpu.dot_dimension_numbers<[1], [0], [0], [1], [0, 0, 1, 1], [], []>} : vector<64x128xf32>, vector<128x256xf32>, vector<64x256xf32> -> vector<64x256xf32>
    %c0_3 = arith.constant 0 : index
    %c0_4 = arith.constant 0 : index
    %3 = vector.load %arg4[%c0_3, %c0_4] : memref<1x256xf32, #tpu.memory_space<vmem>>, vector<1x256xf32>
    %4 = vector.broadcast %3 : vector<1x256xf32> to vector<64x256xf32>
    %5 = arith.addf %2, %4 : vector<64x256xf32>
    %c0_5 = arith.constant 0 : index
    %c0_6 = arith.constant 0 : index
    %6 = vector.load %arg11[%c0_5, %c0_6] : memref<64x256xf32, #tpu.memory_space<vmem>>, vector<64x256xf32>
    tpu.vector_store %arg11[%c0_5, %c0_6], %5 {strides = array<i32>} : memref<64x256xf32, #tpu.memory_space<vmem>>, vector<64x256xf32>,
    %c0_7 = arith.constant 0 : index
    %c0_8 = arith.constant 0 : index
    %7 = vector.load %arg3[%c0_7, %c0_8] : memref<64x256xf32, #tpu.memory_space<vmem>>, vector<64x256xf32>
    %cst_9 = arith.constant 0.000000e+00 : f32
    %8 = vector.broadcast %cst_9 : f32 to vector<8x64xf32>
    %cst_10 = arith.constant 0.000000e+00 : f32
    %9 = vector.broadcast %cst_10 : f32 to vector<8x64xf32>
    %cst_11 = arith.constant dense<0.000000e+00> : vector<8x256xf32>
    %10 = tpu.matmul %8, %7, %cst_11 {dimension_numbers = #tpu.dot_dimension_numbers<[1], [0], [0], [1], [0, 0, 1, 1], [], []>} : vector<8x64xf32>, vector<64x256xf32>, vector<8x256xf32> -> vector<8x256xf32>
    %c0_12 = arith.constant 0 : index
    %c0_13 = arith.constant 0 : index
    %11 = vector.load %arg11[%c0_12, %c0_13] : memref<64x256xf32, #tpu.memory_space<vmem>>, vector<8x256xf32>
    %12 = arith.addf %10, %11 : vector<8x256xf32>
    %13 = arith.negf %12 : vector<8x256xf32>
    %14 = math.exp %13 : vector<8x256xf32>
    %cst_14 = arith.constant 1.000000e+00 : f32
    %15 = vector.broadcast %cst_14 : f32 to vector<8x256xf32>
    %16 = arith.addf %15, %14 : vector<8x256xf32>
    %17 = arith.divf %15, %16 : vector<8x256xf32>
    %18 = vector.extract_strided_slice %17 {offsets = [0, 0], sizes = [8, 64], strides = [1, 1]} : vector<8x256xf32> to vector<8x64xf32>
    %19 = vector.extract_strided_slice %17 {offsets = [0, 64], sizes = [8, 64], strides = [1, 1]} : vector<8x256xf32> to vector<8x64xf32>
    %20 = vector.extract_strided_slice %17 {offsets = [0, 128], sizes = [8, 64], strides = [1, 1]} : vector<8x256xf32> to vector<8x64xf32>
    %21 = vector.extract_strided_slice %17 {offsets = [0, 192], sizes = [8, 64], strides = [1, 1]} : vector<8x256xf32> to vector<8x64xf32>
    %cst_15 = arith.constant 2.000000e+00 : f32
    %22 = vector.broadcast %cst_15 : f32 to vector<8x64xf32>
    %23 = arith.mulf %22, %21 : vector<8x64xf32>
    %cst_16 = arith.constant 1.000000e+00 : f32
    %24 = vector.broadcast %cst_16 : f32 to vector<8x64xf32>
    %25 = arith.subf %23, %24 : vector<8x64xf32>
    %26 = arith.mulf %19, %9 : vector<8x64xf32>
    %27 = arith.mulf %18, %25 : vector<8x64xf32>
    %28 = arith.addf %26, %27 : vector<8x64xf32>
    %29 = math.tanh %28 : vector<8x64xf32>
    %30 = arith.mulf %20, %29 : vector<8x64xf32>
    %cst_17 = arith.constant dense<0.000000e+00> : vector<8x256xf32>
    %31 = tpu.matmul %30, %7, %cst_17 {dimension_numbers = #tpu.dot_dimension_numbers<[1], [0], [0], [1], [0, 0, 1, 1], [], []>} : vector<8x64xf32>, vector<64x256xf32>, vector<8x256xf32> -> vector<8x256xf32>
    %c8 = arith.constant 8 : index
    %c0_18 = arith.constant 0 : index
    %32 = vector.load %arg11[%c8, %c0_18] : memref<64x256xf32, #tpu.memory_space<vmem>>, vector<8x256xf32>
    %33 = arith.addf %31, %32 : vector<8x256xf32>
    %34 = arith.negf %33 : vector<8x256xf32>
    %35 = math.exp %34 : vector<8x256xf32>
    %cst_19 = arith.constant 1.000000e+00 : f32
    %36 = vector.broadcast %cst_19 : f32 to vector<8x256xf32>
    %37 = arith.addf %36, %35 : vector<8x256xf32>
    %38 = arith.divf %36, %37 : vector<8x256xf32>
    %39 = vector.extract_strided_slice %38 {offsets = [0, 0], sizes = [8, 64], strides = [1, 1]} : vector<8x256xf32> to vector<8x64xf32>
    %40 = vector.extract_strided_slice %38 {offsets = [0, 64], sizes = [8, 64], strides = [1, 1]} : vector<8x256xf32> to vector<8x64xf32>
    %41 = vector.extract_strided_slice %38 {offsets = [0, 128], sizes = [8, 64], strides = [1, 1]} : vector<8x256xf32> to vector<8x64xf32>
    %42 = vector.extract_strided_slice %38 {offsets = [0, 192], sizes = [8, 64], strides = [1, 1]} : vector<8x256xf32> to vector<8x64xf32>
    %cst_20 = arith.constant 2.000000e+00 : f32
    %43 = vector.broadcast %cst_20 : f32 to vector<8x64xf32>
    %44 = arith.mulf %43, %42 : vector<8x64xf32>
    %cst_21 = arith.constant 1.000000e+00 : f32
    %45 = vector.broadcast %cst_21 : f32 to vector<8x64xf32>
    %46 = arith.subf %44, %45 : vector<8x64xf32>
    %47 = arith.mulf %40, %28 : vector<8x64xf32>
    %48 = arith.mulf %39, %46 : vector<8x64xf32>
    %49 = arith.addf %47, %48 : vector<8x64xf32>
    %50 = math.tanh %49 : vector<8x64xf32>
    %51 = arith.mulf %41, %50 : vector<8x64xf32>
    %cst_22 = arith.constant dense<0.000000e+00> : vector<8x256xf32>
    %52 = tpu.matmul %51, %7, %cst_22 {dimension_numbers = #tpu.dot_dimension_numbers<[1], [0], [0], [1], [0, 0, 1, 1], [], []>} : vector<8x64xf32>, vector<64x256xf32>, vector<8x256xf32> -> vector<8x256xf32>
    %c16 = arith.constant 16 : index
    %c0_23 = arith.constant 0 : index
    %53 = vector.load %arg11[%c16, %c0_23] : memref<64x256xf32, #tpu.memory_space<vmem>>, vector<8x256xf32>
    %54 = arith.addf %52, %53 : vector<8x256xf32>
    %55 = arith.negf %54 : vector<8x256xf32>
    %56 = math.exp %55 : vector<8x256xf32>
    %cst_24 = arith.constant 1.000000e+00 : f32
    %57 = vector.broadcast %cst_24 : f32 to vector<8x256xf32>
    %58 = arith.addf %57, %56 : vector<8x256xf32>
    %59 = arith.divf %57, %58 : vector<8x256xf32>
    %60 = vector.extract_strided_slice %59 {offsets = [0, 0], sizes = [8, 64], strides = [1, 1]} : vector<8x256xf32> to vector<8x64xf32>
    %61 = vector.extract_strided_slice %59 {offsets = [0, 64], sizes = [8, 64], strides = [1, 1]} : vector<8x256xf32> to vector<8x64xf32>
    %62 = vector.extract_strided_slice %59 {offsets = [0, 128], sizes = [8, 64], strides = [1, 1]} : vector<8x256xf32> to vector<8x64xf32>
    %63 = vector.extract_strided_slice %59 {offsets = [0, 192], sizes = [8, 64], strides = [1, 1]} : vector<8x256xf32> to vector<8x64xf32>
    %cst_25 = arith.constant 2.000000e+00 : f32
    %64 = vector.broadcast %cst_25 : f32 to vector<8x64xf32>
    %65 = arith.mulf %64, %63 : vector<8x64xf32>
    %cst_26 = arith.constant 1.000000e+00 : f32
    %66 = vector.broadcast %cst_26 : f32 to vector<8x64xf32>
    %67 = arith.subf %65, %66 : vector<8x64xf32>
    %68 = arith.mulf %61, %49 : vector<8x64xf32>
    %69 = arith.mulf %60, %67 : vector<8x64xf32>
    %70 = arith.addf %68, %69 : vector<8x64xf32>
    %71 = math.tanh %70 : vector<8x64xf32>
    %72 = arith.mulf %62, %71 : vector<8x64xf32>
    %cst_27 = arith.constant dense<0.000000e+00> : vector<8x256xf32>
    %73 = tpu.matmul %72, %7, %cst_27 {dimension_numbers = #tpu.dot_dimension_numbers<[1], [0], [0], [1], [0, 0, 1, 1], [], []>} : vector<8x64xf32>, vector<64x256xf32>, vector<8x256xf32> -> vector<8x256xf32>
    %c24 = arith.constant 24 : index
    %c0_28 = arith.constant 0 : index
    %74 = vector.load %arg11[%c24, %c0_28] : memref<64x256xf32, #tpu.memory_space<vmem>>, vector<8x256xf32>
    %75 = arith.addf %73, %74 : vector<8x256xf32>
    %76 = arith.negf %75 : vector<8x256xf32>
    %77 = math.exp %76 : vector<8x256xf32>
    %cst_29 = arith.constant 1.000000e+00 : f32
    %78 = vector.broadcast %cst_29 : f32 to vector<8x256xf32>
    %79 = arith.addf %78, %77 : vector<8x256xf32>
    %80 = arith.divf %78, %79 : vector<8x256xf32>
    %81 = vector.extract_strided_slice %80 {offsets = [0, 0], sizes = [8, 64], strides = [1, 1]} : vector<8x256xf32> to vector<8x64xf32>
    %82 = vector.extract_strided_slice %80 {offsets = [0, 64], sizes = [8, 64], strides = [1, 1]} : vector<8x256xf32> to vector<8x64xf32>
    %83 = vector.extract_strided_slice %80 {offsets = [0, 128], sizes = [8, 64], strides = [1, 1]} : vector<8x256xf32> to vector<8x64xf32>
    %84 = vector.extract_strided_slice %80 {offsets = [0, 192], sizes = [8, 64], strides = [1, 1]} : vector<8x256xf32> to vector<8x64xf32>
    %cst_30 = arith.constant 2.000000e+00 : f32
    %85 = vector.broadcast %cst_30 : f32 to vector<8x64xf32>
    %86 = arith.mulf %85, %84 : vector<8x64xf32>
    %cst_31 = arith.constant 1.000000e+00 : f32
    %87 = vector.broadcast %cst_31 : f32 to vector<8x64xf32>
    %88 = arith.subf %86, %87 : vector<8x64xf32>
    %89 = arith.mulf %82, %70 : vector<8x64xf32>
    %90 = arith.mulf %81, %88 : vector<8x64xf32>
    %91 = arith.addf %89, %90 : vector<8x64xf32>
    %92 = math.tanh %91 : vector<8x64xf32>
    %93 = arith.mulf %83, %92 : vector<8x64xf32>
    %cst_32 = arith.constant dense<0.000000e+00> : vector<8x256xf32>
    %94 = tpu.matmul %93, %7, %cst_32 {dimension_numbers = #tpu.dot_dimension_numbers<[1], [0], [0], [1], [0, 0, 1, 1], [], []>} : vector<8x64xf32>, vector<64x256xf32>, vector<8x256xf32> -> vector<8x256xf32>
    %c32 = arith.constant 32 : index
    %c0_33 = arith.constant 0 : index
    %95 = vector.load %arg11[%c32, %c0_33] : memref<64x256xf32, #tpu.memory_space<vmem>>, vector<8x256xf32>
    %96 = arith.addf %94, %95 : vector<8x256xf32>
    %97 = arith.negf %96 : vector<8x256xf32>
    %98 = math.exp %97 : vector<8x256xf32>
    %cst_34 = arith.constant 1.000000e+00 : f32
    %99 = vector.broadcast %cst_34 : f32 to vector<8x256xf32>
    %100 = arith.addf %99, %98 : vector<8x256xf32>
    %101 = arith.divf %99, %100 : vector<8x256xf32>
    %102 = vector.extract_strided_slice %101 {offsets = [0, 0], sizes = [8, 64], strides = [1, 1]} : vector<8x256xf32> to vector<8x64xf32>
    %103 = vector.extract_strided_slice %101 {offsets = [0, 64], sizes = [8, 64], strides = [1, 1]} : vector<8x256xf32> to vector<8x64xf32>
    %104 = vector.extract_strided_slice %101 {offsets = [0, 128], sizes = [8, 64], strides = [1, 1]} : vector<8x256xf32> to vector<8x64xf32>
    %105 = vector.extract_strided_slice %101 {offsets = [0, 192], sizes = [8, 64], strides = [1, 1]} : vector<8x256xf32> to vector<8x64xf32>
    %cst_35 = arith.constant 2.000000e+00 : f32
    %106 = vector.broadcast %cst_35 : f32 to vector<8x64xf32>
    %107 = arith.mulf %106, %105 : vector<8x64xf32>
    %cst_36 = arith.constant 1.000000e+00 : f32
    %108 = vector.broadcast %cst_36 : f32 to vector<8x64xf32>
    %109 = arith.subf %107, %108 : vector<8x64xf32>
    %110 = arith.mulf %103, %91 : vector<8x64xf32>
    %111 = arith.mulf %102, %109 : vector<8x64xf32>
    %112 = arith.addf %110, %111 : vector<8x64xf32>
    %113 = math.tanh %112 : vector<8x64xf32>
    %114 = arith.mulf %104, %113 : vector<8x64xf32>
    %cst_37 = arith.constant dense<0.000000e+00> : vector<8x256xf32>
    %115 = tpu.matmul %114, %7, %cst_37 {dimension_numbers = #tpu.dot_dimension_numbers<[1], [0], [0], [1], [0, 0, 1, 1], [], []>} : vector<8x64xf32>, vector<64x256xf32>, vector<8x256xf32> -> vector<8x256xf32>
    %c40 = arith.constant 40 : index
    %c0_38 = arith.constant 0 : index
    %116 = vector.load %arg11[%c40, %c0_38] : memref<64x256xf32, #tpu.memory_space<vmem>>, vector<8x256xf32>
    %117 = arith.addf %115, %116 : vector<8x256xf32>
    %118 = arith.negf %117 : vector<8x256xf32>
    %119 = math.exp %118 : vector<8x256xf32>
    %cst_39 = arith.constant 1.000000e+00 : f32
    %120 = vector.broadcast %cst_39 : f32 to vector<8x256xf32>
    %121 = arith.addf %120, %119 : vector<8x256xf32>
    %122 = arith.divf %120, %121 : vector<8x256xf32>
    %123 = vector.extract_strided_slice %122 {offsets = [0, 0], sizes = [8, 64], strides = [1, 1]} : vector<8x256xf32> to vector<8x64xf32>
    %124 = vector.extract_strided_slice %122 {offsets = [0, 64], sizes = [8, 64], strides = [1, 1]} : vector<8x256xf32> to vector<8x64xf32>
    %125 = vector.extract_strided_slice %122 {offsets = [0, 128], sizes = [8, 64], strides = [1, 1]} : vector<8x256xf32> to vector<8x64xf32>
    %126 = vector.extract_strided_slice %122 {offsets = [0, 192], sizes = [8, 64], strides = [1, 1]} : vector<8x256xf32> to vector<8x64xf32>
    %cst_40 = arith.constant 2.000000e+00 : f32
    %127 = vector.broadcast %cst_40 : f32 to vector<8x64xf32>
    %128 = arith.mulf %127, %126 : vector<8x64xf32>
    %cst_41 = arith.constant 1.000000e+00 : f32
    %129 = vector.broadcast %cst_41 : f32 to vector<8x64xf32>
    %130 = arith.subf %128, %129 : vector<8x64xf32>
    %131 = arith.mulf %124, %112 : vector<8x64xf32>
    %132 = arith.mulf %123, %130 : vector<8x64xf32>
    %133 = arith.addf %131, %132 : vector<8x64xf32>
    %134 = math.tanh %133 : vector<8x64xf32>
    %135 = arith.mulf %125, %134 : vector<8x64xf32>
    %cst_42 = arith.constant dense<0.000000e+00> : vector<8x256xf32>
    %136 = tpu.matmul %135, %7, %cst_42 {dimension_numbers = #tpu.dot_dimension_numbers<[1], [0], [0], [1], [0, 0, 1, 1], [], []>} : vector<8x64xf32>, vector<64x256xf32>, vector<8x256xf32> -> vector<8x256xf32>
    %c48 = arith.constant 48 : index
    %c0_43 = arith.constant 0 : index
    %137 = vector.load %arg11[%c48, %c0_43] : memref<64x256xf32, #tpu.memory_space<vmem>>, vector<8x256xf32>
    %138 = arith.addf %136, %137 : vector<8x256xf32>
    %139 = arith.negf %138 : vector<8x256xf32>
    %140 = math.exp %139 : vector<8x256xf32>
    %cst_44 = arith.constant 1.000000e+00 : f32
    %141 = vector.broadcast %cst_44 : f32 to vector<8x256xf32>
    %142 = arith.addf %141, %140 : vector<8x256xf32>
    %143 = arith.divf %141, %142 : vector<8x256xf32>
    %144 = vector.extract_strided_slice %143 {offsets = [0, 0], sizes = [8, 64], strides = [1, 1]} : vector<8x256xf32> to vector<8x64xf32>
    %145 = vector.extract_strided_slice %143 {offsets = [0, 64], sizes = [8, 64], strides = [1, 1]} : vector<8x256xf32> to vector<8x64xf32>
    %146 = vector.extract_strided_slice %143 {offsets = [0, 128], sizes = [8, 64], strides = [1, 1]} : vector<8x256xf32> to vector<8x64xf32>
    %147 = vector.extract_strided_slice %143 {offsets = [0, 192], sizes = [8, 64], strides = [1, 1]} : vector<8x256xf32> to vector<8x64xf32>
    %cst_45 = arith.constant 2.000000e+00 : f32
    %148 = vector.broadcast %cst_45 : f32 to vector<8x64xf32>
    %149 = arith.mulf %148, %147 : vector<8x64xf32>
    %cst_46 = arith.constant 1.000000e+00 : f32
    %150 = vector.broadcast %cst_46 : f32 to vector<8x64xf32>
    %151 = arith.subf %149, %150 : vector<8x64xf32>
    %152 = arith.mulf %145, %133 : vector<8x64xf32>
    %153 = arith.mulf %144, %151 : vector<8x64xf32>
    %154 = arith.addf %152, %153 : vector<8x64xf32>
    %155 = math.tanh %154 : vector<8x64xf32>
    %156 = arith.mulf %146, %155 : vector<8x64xf32>
    %cst_47 = arith.constant dense<0.000000e+00> : vector<8x256xf32>
    %157 = tpu.matmul %156, %7, %cst_47 {dimension_numbers = #tpu.dot_dimension_numbers<[1], [0], [0], [1], [0, 0, 1, 1], [], []>} : vector<8x64xf32>, vector<64x256xf32>, vector<8x256xf32> -> vector<8x256xf32>
    %c56 = arith.constant 56 : index
    %c0_48 = arith.constant 0 : index
    %158 = vector.load %arg11[%c56, %c0_48] : memref<64x256xf32, #tpu.memory_space<vmem>>, vector<8x256xf32>
    %159 = arith.addf %157, %158 : vector<8x256xf32>
    %160 = arith.negf %159 : vector<8x256xf32>
    %161 = math.exp %160 : vector<8x256xf32>
    %cst_49 = arith.constant 1.000000e+00 : f32
    %162 = vector.broadcast %cst_49 : f32 to vector<8x256xf32>
    %163 = arith.addf %162, %161 : vector<8x256xf32>
    %164 = arith.divf %162, %163 : vector<8x256xf32>
    %165 = vector.extract_strided_slice %164 {offsets = [0, 0], sizes = [8, 64], strides = [1, 1]} : vector<8x256xf32> to vector<8x64xf32>
    %166 = vector.extract_strided_slice %164 {offsets = [0, 64], sizes = [8, 64], strides = [1, 1]} : vector<8x256xf32> to vector<8x64xf32>
    %167 = vector.extract_strided_slice %164 {offsets = [0, 128], sizes = [8, 64], strides = [1, 1]} : vector<8x256xf32> to vector<8x64xf32>
    %168 = vector.extract_strided_slice %164 {offsets = [0, 192], sizes = [8, 64], strides = [1, 1]} : vector<8x256xf32> to vector<8x64xf32>
    %cst_50 = arith.constant 2.000000e+00 : f32
    %169 = vector.broadcast %cst_50 : f32 to vector<8x64xf32>
    %170 = arith.mulf %169, %168 : vector<8x64xf32>
    %cst_51 = arith.constant 1.000000e+00 : f32
    %171 = vector.broadcast %cst_51 : f32 to vector<8x64xf32>
    %172 = arith.subf %170, %171 : vector<8x64xf32>
    %173 = arith.mulf %166, %154 : vector<8x64xf32>
    %174 = arith.mulf %165, %172 : vector<8x64xf32>
    %175 = arith.addf %173, %174 : vector<8x64xf32>
    %176 = math.tanh %175 : vector<8x64xf32>
    %177 = arith.mulf %167, %176 : vector<8x64xf32>
    %178 = tpu.concatenate %30, %51, %72, %93, %114, %135, %156, %177 in 0 : vector<8x64xf32>, vector<8x64xf32>, vector<8x64xf32>, vector<8x64xf32>, vector<8x64xf32>, vector<8x64xf32>, vector<8x64xf32>, vector<8x64xf32> -> vector<64x64xf32>
    %179 = tpu.concatenate %177, %156, %135, %114, %93, %72, %51, %30 in 0 : vector<8x64xf32>, vector<8x64xf32>, vector<8x64xf32>, vector<8x64xf32>, vector<8x64xf32>, vector<8x64xf32>, vector<8x64xf32>, vector<8x64xf32> -> vector<64x64xf32>
    %180 = vector.extract_strided_slice %178 {offsets = [0, 0], sizes = [64, 32], strides = [1, 1]} : vector<64x64xf32> to vector<64x32xf32>
    %181 = vector.extract_strided_slice %179 {offsets = [0, 32], sizes = [64, 32], strides = [1, 1]} : vector<64x64xf32> to vector<64x32xf32>
    %182 = tpu.concatenate %180, %181 in 1 : vector<64x32xf32>, vector<64x32xf32> -> vector<64x64xf32>
    %c0_52 = arith.constant 0 : index
    %c0_53 = arith.constant 0 : index
    %183 = vector.load %arg5[%c0_52, %c0_53] : memref<64x32xf32, #tpu.memory_space<vmem>>, vector<64x32xf32>
    %cst_54 = arith.constant dense<0.000000e+00> : vector<64x32xf32>
    %184 = tpu.matmul %182, %183, %cst_54 {dimension_numbers = #tpu.dot_dimension_numbers<[1], [0], [0], [1], [0, 0, 1, 1], [], []>} : vector<64x64xf32>, vector<64x32xf32>, vector<64x32xf32> -> vector<64x32xf32>
    %c0_55 = arith.constant 0 : index
    %c0_56 = arith.constant 0 : index
    %185 = vector.load %arg6[%c0_55, %c0_56] : memref<1x32xf32, #tpu.memory_space<vmem>>, vector<1x32xf32>
    %186 = vector.broadcast %185 : vector<1x32xf32> to vector<64x32xf32>
    %187 = arith.addf %184, %186 : vector<64x32xf32>
    %188 = math.tanh %187 : vector<64x32xf32>
    %c0_57 = arith.constant 0 : index
    %c0_58 = arith.constant 0 : index
    %189 = vector.load %arg7[%c0_57, %c0_58] : memref<1x32xf32, #tpu.memory_space<vmem>>, vector<1x32xf32>
    %190 = vector.broadcast %189 : vector<1x32xf32> to vector<64x32xf32>
    %191 = arith.mulf %188, %190 : vector<64x32xf32>
    %cst_59 = arith.constant dense<0.000000e+00> : vector<64xf32>
    %192 = vector.multi_reduction <add>, %191, %cst_59 [1] : vector<64x32xf32> to vector<64xf32>
    %193 = vector.shape_cast %192 : vector<64xf32> to vector<64x1xf32>
    %c0_60 = arith.constant 0 : index
    %c0_61 = arith.constant 0 : index
    %194 = vector.load %arg8[%c0_60, %c0_61] : memref<1x1xf32, #tpu.memory_space<vmem>>, vector<1x1xf32>
    %195 = vector.broadcast %194 : vector<1x1xf32> to vector<64x1xf32>
    %196 = arith.addf %193, %195 : vector<64x1xf32>
    %cst_62 = arith.constant dense<0xFF800000> : vector<1xf32>
    %197 = vector.multi_reduction <maximumf>, %196, %cst_62 [0] : vector<64x1xf32> to vector<1xf32>
    %198 = vector.shape_cast %197 : vector<1xf32> to vector<1x1xf32>
    %199 = vector.broadcast %198 : vector<1x1xf32> to vector<64x1xf32>
    %200 = arith.subf %196, %199 : vector<64x1xf32>
    %201 = math.exp %200 : vector<64x1xf32>
    %202 = vector.broadcast %201 : vector<64x1xf32> to vector<64x64xf32>
    %203 = arith.mulf %202, %182 : vector<64x64xf32>
    %204 = vector.shape_cast %201 : vector<64x1xf32> to vector<64x1xf32>
    %205 = vector.broadcast %204 : vector<64x1xf32> to vector<64x64xf32>
    %206 = tpu.concatenate %203, %205 in 1 : vector<64x64xf32>, vector<64x64xf32> -> vector<64x128xf32>
    %c0_63 = arith.constant 0 : index
    %c0_64 = arith.constant 0 : index
    %207 = vector.load %arg9[%c0_63, %c0_64] : memref<2x64xf32, #tpu.memory_space<vmem>>, vector<2x64xf32>
    %cst_65 = arith.constant dense<0.000000e+00> : vector<2x128xf32>
    %208 = tpu.matmul %207, %206, %cst_65 {dimension_numbers = #tpu.dot_dimension_numbers<[1], [0], [0], [1], [0, 0, 1, 1], [], []>} : vector<2x64xf32>, vector<64x128xf32>, vector<2x128xf32> -> vector<2x128xf32>
    %209 = vector.extract_strided_slice %208 {offsets = [0, 0], sizes = [2, 64], strides = [1, 1]} : vector<2x128xf32> to vector<2x64xf32>
    %210 = vector.extract_strided_slice %208 {offsets = [0, 64], sizes = [2, 1], strides = [1, 1]} : vector<2x128xf32> to vector<2x1xf32>
    %211 = tpu.reciprocal %210 {approx = true} : vector<2x1xf32> -> vector<2x1xf32>
    %212 = vector.broadcast %211 : vector<2x1xf32> to vector<2x64xf32>
    %213 = arith.mulf %209, %212 : vector<2x64xf32>
    %c0_66 = arith.constant 0 : index
    %c0_67 = arith.constant 0 : index
    %214 = vector.load %arg10[%c0_66, %c0_67] : memref<2x64xf32, #tpu.memory_space<vmem>>, vector<2x64xf32>
    tpu.vector_store %arg10[%c0_66, %c0_67], %213 {strides = array<i32>} : memref<2x64xf32, #tpu.memory_space<vmem>>, vector<2x64xf32>,
    return
  }
  func.func @transform_0(%arg0: i32) -> (i32, i32) {
    %c0_i32 = arith.constant 0 : i32
    %c0_i32_0 = arith.constant 0 : i32
    %c0_i32_1 = arith.constant 0 : i32
    return %c0_i32, %c0_i32_0 : i32, i32
  }
  func.func @transform_1(%arg0: i32) -> (i32, i32) {
    %c0_i32 = arith.constant 0 : i32
    %c0_i32_0 = arith.constant 0 : i32
    %c0_i32_1 = arith.constant 0 : i32
    return %c0_i32, %c0_i32_0 : i32, i32
  }
  func.func @transform_2(%arg0: i32) -> (i32, i32) {
    %c0_i32 = arith.constant 0 : i32
    %c0_i32_0 = arith.constant 0 : i32
    %c0_i32_1 = arith.constant 0 : i32
    return %c0_i32, %c0_i32_0 : i32, i32
  }
  func.func @transform_3(%arg0: i32) -> (i32, i32) {
    %c0_i32 = arith.constant 0 : i32
    %c0_i32_0 = arith.constant 0 : i32
    %c0_i32_1 = arith.constant 0 : i32
    return %c0_i32, %c0_i32_0 : i32, i32
  }
  func.func @transform_4(%arg0: i32) -> (i32, i32) {
    %c0_i32 = arith.constant 0 : i32
    %c0_i32_0 = arith.constant 0 : i32
    %c0_i32_1 = arith.constant 0 : i32
    return %c0_i32, %c0_i32_0 : i32, i32
  }
  func.func @transform_5(%arg0: i32) -> (i32, i32) {
    %c0_i32 = arith.constant 0 : i32
    %c0_i32_0 = arith.constant 0 : i32
    %c0_i32_1 = arith.constant 0 : i32
    return %c0_i32, %c0_i32_0 : i32, i32
  }
  func.func @transform_6(%arg0: i32) -> (i32, i32) {
    %c0_i32 = arith.constant 0 : i32
    %c0_i32_0 = arith.constant 0 : i32
    %c0_i32_1 = arith.constant 0 : i32
    return %c0_i32, %c0_i32_0 : i32, i32
  }
  func.func @transform_7(%arg0: i32) -> (i32, i32) {
    %c0_i32 = arith.constant 0 : i32
    %c0_i32_0 = arith.constant 0 : i32
    %c0_i32_1 = arith.constant 0 : i32
    return %c0_i32, %c0_i32_0 : i32, i32
  }
  func.func @transform_8(%arg0: i32) -> (i32, i32) {
    %c0_i32 = arith.constant 0 : i32
    %c0_i32_0 = arith.constant 0 : i32
    %c0_i32_1 = arith.constant 0 : i32
    return %c0_i32, %c0_i32_0 : i32, i32
  }
  func.func @transform_9(%arg0: i32) -> (i32, i32) {
    %c0_i32 = arith.constant 0 : i32
    %c0_i32_0 = arith.constant 0 : i32
    %c0_i32_1 = arith.constant 0 : i32
    return %c0_i32, %c0_i32_0 : i32, i32
  }
}

</mosaic_0001>

<bundles_post_ra>
// kernel: forward.1
= control target key start
LH: loop header
LB: loop body
LE: loop exit
PB: predicated region body
PF: predicated region fallthrough
CT: control target
= control target key end

     0   :  { %s2095_s0 = inlined_call_operand.vmem [shape: f32[64,128], index: 0, kind: input, shape index: {}]   ;;  %s2096_s1 = inlined_call_operand.hbm [shape: f32[128,256], index: 1, kind: input, shape index: {}]   ;;  %s2097_s2 = inlined_call_operand.hbm [shape: f32[64,256], index: 2, kind: input, shape index: {}]   ;;  %s2098_s3 = inlined_call_operand.vmem [shape: f32[1,256], index: 3, kind: input, shape index: {}]   ;;  %s2099_s4 = inlined_call_operand.vmem [shape: f32[64,32], index: 4, kind: input, shape index: {}]   ;;  %s2100_s5 = inlined_call_operand.vmem [shape: f32[1,32], index: 5, kind: input, shape index: {}]   ;;  %s2101_s6 = inlined_call_operand.vmem [shape: f32[1,32], index: 6, kind: input, shape index: {}]   ;;  %s2102_s7 = inlined_call_operand.<no memory space> [shape: f32[1,1], index: 7, kind: input, shape index: {}]   ;;  %s2103_s8 = inlined_call_operand.vmem [shape: f32[2,64], index: 8, kind: input, shape index: {}]   ;;  %s2104_s9 = inlined_call_operand.hbm [shape: f32[2,64], index: 9, kind: output, shape index: {}]  }
   0x1   :  { %v14_v0 = vstv %s2102_s7 }
   0x2   :  { %15 = vst [vmem:[#allocation3] sm:$0x1] %v14_v0 }
   0x3   :  { %16 = vsyncpa [#allocation5], 0 }
   0x4   :  { %17 = vsyncpa [#allocation8], 0 }
   0x5   :  { %18 = vsyncpa [#allocation6], 0  ;;  %s25_s13 = sshll.u32 %s2096_s1, 4  ;;  %s1595_s14 = smov [#allocation4]   ;;  %s26_s13 = int_to_ptr.hbm [resolvable:$true] %s25_s13 }
   0x6   :  { %s27_s15 = sshll.u32 %s1595_s14, 4  ;;  %s38_s18 = sshll.u32 %s2097_s2, 4  ;;  %s28_s15 = int_to_ptr.vmem [resolvable:$true] %s27_s15  ;;  %s39_s18 = int_to_ptr.hbm [resolvable:$true] %s38_s18 }
   0x7   :  { %s1596_s19 = smov 256   ;;  %s1597_s20 = smov 16  }
   0x8   :  { %33 = dma.hbm_to_vmem [thread:$0]  %s26_s13, 4096, %s28_s15, [#allocation5], %s1596_s19, %s1596_s19, %s1597_s20  }
   0x9   :  { %s1598_s7 = smov [#allocation7]  }
   0xa   :  { %s40_s21 = sshll.u32 %s1598_s7, 4  ;;  %s41_s21 = int_to_ptr.vmem [resolvable:$true] %s40_s21 }
   0xb   :  { %46 = dma.hbm_to_vmem [thread:$0]  %s39_s18, 2048, %s41_s21, [#allocation8], %s1596_s19, %s1596_s19, %s1597_s20  }
   0xc   :  { %1589 = dma.done.wait [#allocation5], 4096  }
   0xd   :  { %1590 = vsyncadd [#allocation5], 4294963200 }
   0xe   :  { %1591 = dma.done.wait [#allocation8], 2048  }
   0xf   :  { %1592 = vsyncadd [#allocation8], 4294965248  ;;  %v105_v1 = vld [vmem:[#allocation4 + $0xf0] sm:$0xff]  ;;  %v106_v2 = vld [vmem:[#allocation4 + $0xf8] sm:$0xff]  ;;  %v1599_v35 = vmov 0.0   ;;  %vm229_vm8 = vcmask 523264  }
  0x10   :  { %v103_v3 = vld [vmem:[#allocation4 + $0xe0] sm:$0xff]  ;;  %113 = vmatpush.msra.mxu0 %v105_v1  ;;  %154 = vmatpush.msra.mxu1 %v106_v2  ;;  %v104_v4 = vld [vmem:[#allocation4 + $0xe8] sm:$0xff]  ;;  %v101_v5 = vld [vmem:[#allocation4 + $0xd0] sm:$0xff]  ;;  %s1603_s11 = smov [#allocation9]  }
  0x11   :  { %v102_v6 = vld [vmem:[#allocation4 + $0xd8] sm:$0xff]  ;;  %v99_v7 = vld [vmem:[#allocation4 + $0xc0] sm:$0xff]  ;;  %v100_v8 = vld [vmem:[#allocation4 + $0xc8] sm:$0xff]  ;;  %s1326_s12 = sshll.u32 %s1603_s11, 4  ;;  %s1327_s12 = int_to_ptr.vmem [resolvable:$true] %s1326_s12 }
  0x12   :  { %114 = vmatpush.msra.mxu0 %v103_v3  ;;  %155 = vmatpush.msra.mxu1 %v104_v4  ;;  %v1663_v9 = vld [vmem:[#allocation7 + $0x78] sm:$0xff]  ;;  %v1665_v10 = vld [vmem:[#allocation7 + $0x68] sm:$0xff]  ;;  %v97_v11 = vld [vmem:[#allocation4 + $0xb0] sm:$0xff] }
  0x13   :  { %v98_v12 = vld [vmem:[#allocation4 + $0xb8] sm:$0xff]  ;;  %261 = vmatpush.msra.mxu3 %v1663_v9  ;;  %v95_v14 = vld [vmem:[#allocation4 + $0xa0] sm:$0xff]  ;;  %v96_v15 = vld [vmem:[#allocation4 + $0xa8] sm:$0xff] }
  0x14   :  { %115 = vmatpush.msra.mxu0 %v101_v5  ;;  %156 = vmatpush.msra.mxu1 %v102_v6  ;;  %v1668_v13 = vld [vmem:[#allocation7 + $0x58] sm:$0xff]  ;;  %v1671_v16 = vld [vmem:[#allocation7 + $0x48] sm:$0xff]  ;;  %v93_v17 = vld [vmem:[#allocation4 + $0x90] sm:$0xff] }
  0x15   :  { %262 = vmatpush.msra.mxu3 %v1665_v10  ;;  %v94_v18 = vld [vmem:[#allocation4 + $0x98] sm:$0xff]  ;;  %v91_v20 = vld [vmem:[#allocation4 + $0x80] sm:$0xff]  ;;  %v92_v21 = vld [vmem:[#allocation4 + $0x88] sm:$0xff] }
  0x16   :  { %116 = vmatpush.msra.mxu0 %v99_v7  ;;  %157 = vmatpush.msra.mxu1 %v100_v8  ;;  %v1674_v19 = vld [vmem:[#allocation7 + $0x38] sm:$0xff]  ;;  %v89_v22 = vld [vmem:[#allocation4 + $0x70] sm:$0xff]  ;;  %v1677_v23 = vld [vmem:[#allocation7 + $0x28] sm:$0xff] }
  0x17   :  { %263 = vmatpush.msra.mxu3 %v1668_v13  ;;  %v90_v24 = vld [vmem:[#allocation4 + $0x78] sm:$0xff]  ;;  %v87_v26 = vld [vmem:[#allocation4 + $0x60] sm:$0xff]  ;;  %v88_v27 = vld [vmem:[#allocation4 + $0x68] sm:$0xff] }
  0x18   :  { %117 = vmatpush.msra.mxu0 %v97_v11  ;;  %158 = vmatpush.msra.mxu1 %v98_v12  ;;  %v1680_v25 = vld [vmem:[#allocation7 + $0x18] sm:$0xff]  ;;  %v1683_v28 = vld [vmem:[#allocation7 + $0x8] sm:$0xff]  ;;  %v85_v29 = vld [vmem:[#allocation4 + $0x50] sm:$0xff] }
  0x19   :  { %264 = vmatpush.msra.mxu3 %v1671_v16  ;;  %v86_v30 = vld [vmem:[#allocation4 + $0x58] sm:$0xff]  ;;  %v83_v31 = vld [vmem:[#allocation4 + $0x40] sm:$0xff]  ;;  %v84_v32 = vld [vmem:[#allocation4 + $0x48] sm:$0xff] }
  0x1a   :  { %118 = vmatpush.msra.mxu0 %v95_v14  ;;  %159 = vmatpush.msra.mxu1 %v96_v15  ;;  %v81_v33 = vld [vmem:[#allocation4 + $0x30] sm:$0xff]  ;;  %v82_v34 = vld [vmem:[#allocation4 + $0x38] sm:$0xff]  ;;  %v79_v36 = vld [vmem:[#allocation4 + $0x20] sm:$0xff] }
  0x1b   :  { %265 = vmatpush.msra.mxu3 %v1674_v19  ;;  %v80_v37 = vld [vmem:[#allocation4 + $0x28] sm:$0xff]  ;;  %v77_v38 = vld [vmem:[#allocation4 + $0x10] sm:$0xff]  ;;  %v78_v39 = vld [vmem:[#allocation4 + $0x18] sm:$0xff] }
  0x1c   :  { %119 = vmatpush.msra.mxu0 %v93_v17  ;;  %160 = vmatpush.msra.mxu1 %v94_v18  ;;  %v75_v40 = vld [vmem:[#allocation4] sm:$0xff]  ;;  %v76_v41 = vld [vmem:[#allocation4 + $0x8] sm:$0xff]  ;;  %v1705_v45 = vld [vmem:[#allocation7 + $0x70] sm:$0xff] }
  0x1d   :  { %266 = vmatpush.msra.mxu3 %v1677_v23  ;;  %v67_v42 = vld [vmem:[%s2095_s0] sm:$0xff]  ;;  %v68_v43 = vld [vmem:[%s2095_s0 + $0x8] sm:$0xff]  ;;  %v69_v44 = vld [vmem:[%s2095_s0 + $0x10] sm:$0xff]  ;;  %547 = vmatpush.msra.mxu2 %v1705_v45 }
  0x1e   :  { %120 = vmatpush.msra.mxu0 %v91_v20  ;;  %161 = vmatpush.msra.mxu1 %v92_v21  ;;  %v1707_v46 = vld [vmem:[#allocation7 + $0x60] sm:$0xff]  ;;  %v1711_v47 = vld [vmem:[#allocation7 + $0x50] sm:$0xff] }
  0x1f   :  { %267 = vmatpush.msra.mxu3 %v1680_v25  ;;  %v1717_v48 = vld [vmem:[#allocation7 + $0x40] sm:$0xff]  ;;  %548 = vmatpush.msra.mxu2 %v1707_v46  ;;  %v70_v49 = vld [vmem:[%s2095_s0 + $0x18] sm:$0xff]  ;;  %v73_v56 = vld [vmem:[%s2095_s0 + $0x30] sm:$0xff] }
  0x20   :  { %121 = vmatpush.msra.mxu0 %v89_v22  ;;  %162 = vmatpush.msra.mxu1 %v90_v24  ;;  %v1730_v50 = vld [vmem:[#allocation7 + $0x30] sm:$0xff]  ;;  %v1732_v51 = vld [vmem:[#allocation7 + $0x20] sm:$0xff] }
  0x21   :  { %268 = vmatpush.msra.mxu3 %v1683_v28  ;;  %549 = vmatpush.msra.mxu2 %v1711_v47  ;;  %v1736_v52 = vld [vmem:[#allocation7 + $0x10] sm:$0xff]  ;;  %v1742_v53 = vld [vmem:[#allocation7] sm:$0xff] }
  0x22   :  { %122 = vmatpush.msra.mxu0 %v87_v26  ;;  %163 = vmatpush.msra.mxu1 %v88_v27  ;;  %v71_v54 = vld [vmem:[%s2095_s0 + $0x20] sm:$0xff]  ;;  %v72_v55 = vld [vmem:[%s2095_s0 + $0x28] sm:$0xff]  ;;  %v74_v57 = vld [vmem:[%s2095_s0 + $0x38] sm:$0xff]  ;;  %s1328_s0 = sshll.u32 %s2104_s9, 4  ;;  %s1329_s0 = int_to_ptr.hbm [resolvable:$true] %s1328_s0 }
  0x23   :  { %269 = vmatmul.f32.vlgmr.msra.gmra.mxu3 %v1599_v35  ;;  %550 = vmatpush.msra.mxu2 %v1717_v48  ;;  %v107_v58 = vld [vmem:[%s2098_s3] sm:$0x3]  ;;  %s1600_s3 = smov 64  }
  0x24   :  { %123 = vmatpush.msra.mxu0 %v85_v29  ;;  %164 = vmatpush.msra.mxu1 %v86_v30  ;;  %v1804_v59 = vperm.slane %v107_v58, 1  ;;  %v109_v2 = vperm.slane %v107_v58, 0 }
  0x25   :  { %363 = vmatpush.msrb.mxu3 %v1663_v9  ;;  %551 = vmatpush.msra.mxu2 %v1730_v50 }
  0x26   :  { %124 = vmatpush.msra.mxu0 %v83_v31  ;;  %165 = vmatpush.msra.mxu1 %v84_v32 }
  0x27   :  { %364 = vmatpush.msrb.mxu3 %v1665_v10  ;;  %552 = vmatpush.msra.mxu2 %v1732_v51 }
  0x28   :  { %125 = vmatpush.msra.mxu0 %v81_v33  ;;  %166 = vmatpush.msra.mxu1 %v82_v34 }
  0x29   :  { %365 = vmatpush.msrb.mxu3 %v1668_v13  ;;  %553 = vmatpush.msra.mxu2 %v1736_v52 }
  0x2a   :  { %126 = vmatpush.msra.mxu0 %v79_v36  ;;  %167 = vmatpush.msra.mxu1 %v80_v37 }
  0x2b   :  { %366 = vmatpush.msrb.mxu3 %v1671_v16  ;;  %554 = vmatpush.msra.mxu2 %v1742_v53 }
  0x2c   :  { %127 = vmatpush.msra.mxu0 %v77_v38  ;;  %168 = vmatpush.msra.mxu1 %v78_v39 }
  0x2d   :  { %367 = vmatpush.msrb.mxu3 %v1674_v19  ;;  %649 = vmatpush.msrb.mxu2 %v1705_v45 }
  0x2e   :  { %128 = vmatpush.msra.mxu0 %v75_v40  ;;  %169 = vmatpush.msra.mxu1 %v76_v41 }
  0x2f   :  { %129 = vmatmul.f32.vlgmr.msra.gmra.mxu0 %v67_v42  ;;  %170 = vmatmul.f32.vlgmr.msra.gmra.mxu1 %v67_v42 }
  0x30   :  { %368 = vmatpush.msrb.mxu3 %v1677_v23  ;;  %241 = vmatpush.msrb.mxu0 %v1705_v45 }
  0x31   :  { %343 = vmatpush.msrb.mxu1 %v1705_v45  ;;  %650 = vmatpush.msrb.mxu2 %v1707_v46 }
  0x32   :  { %369 = vmatpush.msrb.mxu3 %v1680_v25  ;;  %242 = vmatpush.msrb.mxu0 %v1707_v46 }
  0x33   :  { %344 = vmatpush.msrb.mxu1 %v1707_v46  ;;  %651 = vmatpush.msrb.mxu2 %v1711_v47 }
  0x34   :  { %370 = vmatpush.msrb.mxu3 %v1683_v28  ;;  %243 = vmatpush.msrb.mxu0 %v1711_v47 }
  0x35   :  { %345 = vmatpush.msrb.mxu1 %v1711_v47  ;;  %652 = vmatpush.msrb.mxu2 %v1717_v48 }
  0x36   :  { %445 = vmatpush.msra.mxu3 %v1705_v45  ;;  %244 = vmatpush.msrb.mxu0 %v1717_v48 }
  0x37   :  { %132 = vmatmul.f32.gmra.mxu0 %v68_v43  ;;  %173 = vmatmul.f32.gmra.mxu1 %v68_v43 }
  0x38   :  { %446 = vmatpush.msra.mxu3 %v1707_v46  ;;  %346 = vmatpush.msrb.mxu1 %v1717_v48 }
  0x39   :  { %245 = vmatpush.msrb.mxu0 %v1730_v50  ;;  %653 = vmatpush.msrb.mxu2 %v1730_v50 }
  0x3a   :  { %447 = vmatpush.msra.mxu3 %v1711_v47  ;;  %347 = vmatpush.msrb.mxu1 %v1730_v50 }
  0x3b   :  { %246 = vmatpush.msrb.mxu0 %v1732_v51  ;;  %654 = vmatpush.msrb.mxu2 %v1732_v51 }
  0x3c   :  { %448 = vmatpush.msra.mxu3 %v1717_v48  ;;  %348 = vmatpush.msrb.mxu1 %v1732_v51 }
  0x3d   :  { %247 = vmatpush.msrb.mxu0 %v1736_v52  ;;  %655 = vmatpush.msrb.mxu2 %v1736_v52 }
  0x3e   :  { %449 = vmatpush.msra.mxu3 %v1730_v50  ;;  %349 = vmatpush.msrb.mxu1 %v1736_v52 }
  0x3f   :  { %135 = vmatmul.f32.gmra.mxu0 %v69_v44  ;;  %176 = vmatmul.f32.gmra.mxu1 %v69_v44 }
  0x40   :  { %450 = vmatpush.msra.mxu3 %v1732_v51  ;;  %248 = vmatpush.msrb.mxu0 %v1742_v53 }
  0x41   :  { %350 = vmatpush.msrb.mxu1 %v1742_v53  ;;  %656 = vmatpush.msrb.mxu2 %v1742_v53 }
  0x42   :  { %451 = vmatpush.msra.mxu3 %v1736_v52  ;;  %751 = vmatpush.msra.mxu0 %v1705_v45 }
  0x43   :  { %771 = vmatpush.msra.mxu1 %v1663_v9 }
  0x44   :  { %452 = vmatpush.msra.mxu3 %v1742_v53  ;;  %752 = vmatpush.msra.mxu0 %v1707_v46 }
  0x45   :  { %772 = vmatpush.msra.mxu1 %v1665_v10 }
  0x46   :  { %753 = vmatpush.msra.mxu0 %v1711_v47 }
  0x47   :  { %138 = vmatmul.f32.gmra.mxu0 %v70_v49  ;;  %179 = vmatmul.f32.gmra.mxu1 %v70_v49 }
  0x48   :  { %773 = vmatpush.msra.mxu1 %v1668_v13  ;;  %754 = vmatpush.msra.mxu0 %v1717_v48 }
  0x4a   :  { %774 = vmatpush.msra.mxu1 %v1671_v16  ;;  %755 = vmatpush.msra.mxu0 %v1730_v50 }
  0x4c   :  { %775 = vmatpush.msra.mxu1 %v1674_v19  ;;  %756 = vmatpush.msra.mxu0 %v1732_v51 }
  0x4e   :  { %776 = vmatpush.msra.mxu1 %v1677_v23  ;;  %757 = vmatpush.msra.mxu0 %v1736_v52 }
  0x4f   :  { %141 = vmatmul.f32.gmra.mxu0 %v71_v54  ;;  %182 = vmatmul.f32.gmra.mxu1 %v71_v54 }
  0x50   :  { %777 = vmatpush.msra.mxu1 %v1680_v25  ;;  %758 = vmatpush.msra.mxu0 %v1742_v53 }
  0x52   :  { %778 = vmatpush.msra.mxu1 %v1683_v28 }
  0x57   :  { %144 = vmatmul.f32.gmra.mxu0 %v72_v55  ;;  %185 = vmatmul.f32.gmra.mxu1 %v72_v55 }
  0x5f   :  { %147 = vmatmul.f32.gmra.mxu0 %v73_v56  ;;  %188 = vmatmul.f32.gmra.mxu1 %v73_v56 }
  0x67   :  { %150 = vmatmul.f32.gmra.mxu0 %v74_v57  ;;  %191 = vmatmul.f32.gmra.mxu1 %v74_v57 }
  0x6f   :  { %249 = vmatmul.f32.vlgmr.msrb.gmra.mxu0 %v1599_v35 }
  0x70   :  { %955 = vmatpush.msrb.mxu0 %v1705_v45 }
  0x72   :  { %956 = vmatpush.msrb.mxu0 %v1707_v46 }
  0x74   :  { %957 = vmatpush.msrb.mxu0 %v1711_v47 }
  0x76   :  { %958 = vmatpush.msrb.mxu0 %v1717_v48 }
  0x78   :  { %959 = vmatpush.msrb.mxu0 %v1730_v50 }
  0x7a   :  { %960 = vmatpush.msrb.mxu0 %v1732_v51 }
  0x7c   :  { %961 = vmatpush.msrb.mxu0 %v1736_v52 }
  0x7e   :  { %962 = vmatpush.msrb.mxu0 %v1742_v53 }
  0xa6   :  { %v270_v60 = vpop.f32.mrf.mxu3 }
  0xac   :  { %v130_v61 = vpop.f32.mrf.mxu0  ;;  %v171_v62 = vpop.f32.mrf.mxu1 }
  0xad   :  { %v172_v63 = vadd.f32 %v171_v62, %v1804_v59  ;;  %v131_v40 = vadd.f32 %v130_v61, %v109_v2 }
  0xaf   :  { %v271_v0 = vadd.f32 %v270_v60, %v172_v63 }
  0xb1   :  { %v1340_v1 = vmul.f32 -1.442695, %v271_v0 }
  0xb3   :  { %1403 = vpow2.f32 %v1340_v1 }
  0xb4   :  { %v133_v3 = vpop.f32.mrf.mxu0 }
  0xb5   :  { %v1807_v4 = vadd.f32 %v133_v3, %v109_v2 }
  0xb9   :  { %v1404_v5 = vpop.eup %1403 }
  0xba   :  { %v280_v6 = vadd.f32 1.0, %v1404_v5 }
  0xbc   :  { %1405 = vrcp.f32 %v280_v6  ;;  %v136_v7 = vpop.f32.mrf.mxu0  ;;  %v307_v18 = vand.u32 2147483648, %v280_v6  ;;  %v305_v21 = vand.u32 2147483647, %v280_v6  ;;  %vm301_vm1 = vweird.f32 %v280_v6 }
  0xbd   :  { %v1809_v8 = vadd.f32 %v136_v7, %v109_v2 }
  0xbe   :  { %v308_v24 = vor.u32 1.1754944e-38, %v307_v18  ;;  %vm306_vm3 = vcmp.eq.f32.partialorder %v305_v21, 8.507059e+37 }
  0xc2   :  { %v1406_v11 = vpop.eup %1405 }
  0xc3   :  { %v297_v12 = vmul.f32 %v1406_v11, %v280_v6  ;;  %vm302_vm0 = vweird.f32 %v1406_v11 }
  0xc4   :  { %v139_v14 = vpop.f32.mrf.mxu0  ;;  %vm303_vm2 = vmor %vm301_vm1, %vm302_vm0 }
  0xc5   :  { %v1811_v15 = vadd.f32 %v139_v14, %v109_v2  ;;  %v298_v17 = vsub.f32 1.0, %v297_v12  ;;  %v174_v12 = vpop.f32.mrf.mxu1 }
  0xc6   :  { %v175_v14 = vadd.f32 %v174_v12, %v1804_v59 }
  0xc7   :  { %v299_v20 = vmul.f32 %v1406_v11, %v298_v17 }
  0xc9   :  { %v300_v22 = vadd.f32 %v1406_v11, %v299_v20 }
  0xcb   :  { %v304_v26 = vsel %vm303_vm2, %v1406_v11, %v300_v22 }
  0xcc   :  { %v142_v27 = vpop.f32.mrf.mxu0  ;;  %v309_v29 = vsel %vm306_vm3, %v308_v24, %v304_v26 }
  0xcd   :  { %v1813_v30 = vadd.f32 %v142_v27, %v109_v2  ;;  %v311_v31 = vmul.f32 2.0, %v309_v29 }
  0xcf   :  { %v1341_v32 = vadd.f32 -1.0, %v311_v31 }
  0xd1   :  { %315 = vrot.lane.b32.xlu0 %v1341_v32, %s1600_s3 }
  0xd4   :  { %v145_v33 = vpop.f32.mrf.mxu0 }
  0xd5   :  { %v1816_v34 = vadd.f32 %v145_v33, %v109_v2 }
  0xdc   :  { %v148_v35 = vpop.f32.mrf.mxu0 }
  0xdd   :  { %v1818_v36 = vadd.f32 %v148_v35, %v109_v2 }
  0xe4   :  { %v151_v37 = vpop.f32.mrf.mxu0 }
  0xe5   :  { %v1820_v38 = vadd.f32 %v151_v37, %v109_v2 }
  0xec   :  { %v250_v39 = vpop.f32.mrf.mxu0 }
  0xed   :  { %v251_v41 = vadd.f32 %v250_v39, %v131_v40 }
  0xef   :  { %v1339_v42 = vmul.f32 -1.442695, %v251_v41 }
  0xf1   :  { %1407 = vpow2.f32 %v1339_v42  ;;  %v177_v42 = vpop.f32.mrf.mxu1 }
  0xf7   :  { %v1408_v43 = vpop.eup %1407 }
  0xf8   :  { %v279_v44 = vadd.f32 1.0, %v1408_v43 }
  0xf9   :  { %v1851_v43 = vpop.f32.mrf.mxu1 }
  0xfa   :  { %1409 = vrcp.f32 %v279_v44  ;;  %v292_v58 = vand.u32 2147483648, %v279_v44  ;;  %vm286_vm5 = vweird.f32 %v279_v44  ;;  %v290_v60 = vand.u32 2147483647, %v279_v44 }
  0xfc   :  { %v293_v63 = vor.u32 1.1754944e-38, %v292_v58  ;;  %vm291_vm7 = vcmp.eq.f32.partialorder %v290_v60, 8.507059e+37 }
 0x100   :  { %v1410_v49 = vpop.eup %1409 }
 0x101   :  { %v282_v54 = vmul.f32 %v1410_v49, %v279_v44  ;;  %vm287_vm4 = vweird.f32 %v1410_v49  ;;  %v1853_v44 = vpop.f32.mrf.mxu1 }
 0x102   :  { %vm288_vm6 = vmor %vm286_vm5, %vm287_vm4 }
 0x103   :  { %v283_v55 = vsub.f32 1.0, %v282_v54 }
 0x105   :  { %v284_v56 = vmul.f32 %v1410_v49, %v283_v55 }
 0x107   :  { %v285_v57 = vadd.f32 %v1410_v49, %v284_v56 }
 0x109   :  { %v289_v62 = vsel %vm288_vm6, %v1410_v49, %v285_v57  ;;  %v1855_v49 = vpop.f32.mrf.mxu1 }
 0x10a   :  { %v294_v0 = vsel %vm291_vm7, %v293_v63, %v289_v62 }
 0x10b   :  { %v313_v2 = vmul.f32 0.0, %v294_v0 }
 0x111   :  { %v1857_v54 = vpop.f32.mrf.mxu1 }
 0x119   :  { %v1859_v55 = vpop.f32.mrf.mxu1 }
 0x143   :  { %v316_v61 = vpop.permute.xlu0 %315 }
 0x144   :  { %v318_v1 = vmul.f32 %v316_v61, %v294_v0 }
 0x146   :  { %320 = vrot.lane.b32.xlu0 %v318_v1, %s1600_s3 }
 0x1b8   :  { %v321_v3 = vpop.permute.xlu0 %320 }
 0x1b9   :  { %v1823_v5 = vadd.f32 %v321_v3, %v313_v2 }
 0x1bb   :  { %1411 = vtanh.f32 %v1823_v5 }
 0x1c1   :  { %v1412_v6 = vpop.eup %1411 }
 0x1c2   :  { %326 = vrot.lane.b32.xlu1 %v1412_v6, %s1600_s3 }
 0x234   :  { %v327_v7 = vpop.permute.xlu1 %326 }
 0x235   :  { %v1827_v11 = vmul.f32 %v327_v7, %v309_v29 }
 0x237   :  { %1342 = vmatmul.msk.f32.vlgmr.msrb.gmra.mxu1 %vm229_vm8, %v1827_v11  ;;  %1343 = vmatmul.msk.f32.vlgmr.msrb.gmra.mxu3 %vm229_vm8, %v1827_v11 }
 0x238   :  { %465 = vmatpush.msrb.mxu3 %v1663_v9  ;;  %975 = vmatpush.msrb.mxu1 %v1663_v9 }
 0x23a   :  { %466 = vmatpush.msrb.mxu3 %v1665_v10  ;;  %976 = vmatpush.msrb.mxu1 %v1665_v10 }
 0x23c   :  { %467 = vmatpush.msrb.mxu3 %v1668_v13  ;;  %977 = vmatpush.msrb.mxu1 %v1668_v13 }
 0x23e   :  { %468 = vmatpush.msrb.mxu3 %v1671_v16  ;;  %978 = vmatpush.msrb.mxu1 %v1671_v16 }
 0x240   :  { %469 = vmatpush.msrb.mxu3 %v1674_v19  ;;  %979 = vmatpush.msrb.mxu1 %v1674_v19 }
 0x242   :  { %470 = vmatpush.msrb.mxu3 %v1677_v23  ;;  %980 = vmatpush.msrb.mxu1 %v1677_v23 }
 0x244   :  { %471 = vmatpush.msrb.mxu3 %v1680_v25  ;;  %981 = vmatpush.msrb.mxu1 %v1680_v25 }
 0x246   :  { %472 = vmatpush.msrb.mxu3 %v1683_v28  ;;  %982 = vmatpush.msrb.mxu1 %v1683_v28 }
 0x2b4   :  { %v352_v56 = vpop.f32.mrf.mxu1 }
 0x2b5   :  { %v353_v57 = vadd.f32 %v352_v56, %v1807_v4 }
 0x2b7   :  { %v1344_v58 = vmul.f32 -1.442695, %v353_v57 }
 0x2ba   :  { %v372_v17 = vpop.f32.mrf.mxu3 }
 0x2bb   :  { %v373_v18 = vadd.f32 %v372_v17, %v175_v14 }
 0x2bd   :  { %v1345_v20 = vmul.f32 -1.442695, %v373_v18 }
 0x2bf   :  { %1413 = vpow2.f32 %v1345_v20 }
 0x2c5   :  { %v1414_v21 = vpop.eup %1413 }
 0x2c6   :  { %v382_v22 = vadd.f32 1.0, %v1414_v21 }
 0x2c8   :  { %1415 = vrcp.f32 %v382_v22  ;;  %v409_v29 = vand.u32 2147483648, %v382_v22  ;;  %v407_v32 = vand.u32 2147483647, %v382_v22  ;;  %vm403_vm10 = vweird.f32 %v382_v22 }
 0x2c9   :  { %1417 = vpow2.f32 %v1344_v58 }
 0x2ca   :  { %v410_v35 = vor.u32 1.1754944e-38, %v409_v29  ;;  %vm408_vm12 = vcmp.eq.f32.partialorder %v407_v32, 8.507059e+37  ;;  %v178_v29 = vadd.f32 %v177_v42, %v1804_v59 }
 0x2ce   :  { %v1416_v24 = vpop.eup %1415 }
 0x2cf   :  { %v399_v26 = vmul.f32 %v1416_v24, %v382_v22  ;;  %vm404_vm9 = vweird.f32 %v1416_v24  ;;  %v1418_v60 = vpop.eup %1417 }
 0x2d0   :  { %vm405_vm11 = vmor %vm403_vm10, %vm404_vm9  ;;  %v381_v62 = vadd.f32 1.0, %v1418_v60 }
 0x2d1   :  { %v400_v27 = vsub.f32 1.0, %v399_v26 }
 0x2d2   :  { %1419 = vrcp.f32 %v381_v62  ;;  %v394_v3 = vand.u32 2147483648, %v381_v62  ;;  %vm388_vm14 = vweird.f32 %v381_v62  ;;  %v392_v6 = vand.u32 2147483647, %v381_v62 }
 0x2d3   :  { %v401_v31 = vmul.f32 %v1416_v24, %v400_v27 }
 0x2d4   :  { %v395_v12 = vor.u32 1.1754944e-38, %v394_v3  ;;  %vm393_vm0 = vcmp.eq.f32.partialorder %v392_v6, 8.507059e+37 }
 0x2d5   :  { %v402_v33 = vadd.f32 %v1416_v24, %v401_v31 }
 0x2d7   :  { %v406_v37 = vsel %vm405_vm11, %v1416_v24, %v402_v33 }
 0x2d8   :  { %v411_v39 = vsel %vm408_vm12, %v410_v35, %v406_v37  ;;  %v1420_v63 = vpop.eup %1419 }
 0x2d9   :  { %v413_v40 = vmul.f32 2.0, %v411_v39  ;;  %v384_v61 = vmul.f32 %v1420_v63, %v381_v62  ;;  %vm389_vm13 = vweird.f32 %v1420_v63 }
 0x2da   :  { %vm390_vm15 = vmor %vm388_vm14, %vm389_vm13 }
 0x2db   :  { %v1346_v41 = vadd.f32 -1.0, %v413_v40  ;;  %v385_v0 = vsub.f32 1.0, %v384_v61 }
 0x2dd   :  { %417 = vrot.lane.b32.xlu1 %v1346_v41, %s1600_s3  ;;  %v386_v1 = vmul.f32 %v1420_v63, %v385_v0 }
 0x2df   :  { %v387_v2 = vadd.f32 %v1420_v63, %v386_v1 }
 0x2e1   :  { %v391_v7 = vsel %vm390_vm15, %v1420_v63, %v387_v2 }
 0x2e2   :  { %v396_v4 = vsel %vm393_vm0, %v395_v12, %v391_v7 }
 0x2e3   :  { %v415_v18 = vmul.f32 %v396_v4, %v1823_v5 }
 0x34f   :  { %v418_v14 = vpop.permute.xlu1 %417 }
 0x350   :  { %v420_v17 = vmul.f32 %v418_v14, %v396_v4 }
 0x352   :  { %422 = vrot.lane.b32.xlu2 %v420_v17, %s1600_s3 }
 0x3ac   :  { %v423_v20 = vpop.permute.xlu2 %422 }
 0x3ad   :  { %v1864_v21 = vadd.f32 %v423_v20, %v415_v18 }
 0x3af   :  { %1421 = vtanh.f32 %v1864_v21 }
 0x3b5   :  { %v1422_v22 = vpop.eup %1421 }
 0x3b6   :  { %428 = vrot.lane.b32.xlu2 %v1422_v22, %s1600_s3 }
 0x410   :  { %v429_v24 = vpop.permute.xlu2 %428 }
 0x411   :  { %v1868_v26 = vmul.f32 %v429_v24, %v411_v39 }
 0x413   :  { %1347 = vmatmul.msk.f32.vlgmr.msra.gmra.mxu3 %vm229_vm8, %v1868_v26 }
 0x414   :  { %567 = vmatpush.msra.mxu3 %v1663_v9 }
 0x416   :  { %568 = vmatpush.msra.mxu3 %v1665_v10 }
 0x418   :  { %569 = vmatpush.msra.mxu3 %v1668_v13 }
 0x41a   :  { %570 = vmatpush.msra.mxu3 %v1671_v16 }
 0x41b   :  { %1348 = vmatmul.msk.f32.vlgmr.msrb.gmra.mxu3 %vm229_vm8, %v1868_v26 }
 0x41c   :  { %571 = vmatpush.msra.mxu3 %v1674_v19 }
 0x41e   :  { %572 = vmatpush.msra.mxu3 %v1677_v23 }
 0x420   :  { %573 = vmatpush.msra.mxu3 %v1680_v25 }
 0x422   :  { %574 = vmatpush.msra.mxu3 %v1683_v28 }
 0x424   :  { %669 = vmatpush.msrb.mxu3 %v1663_v9 }
 0x426   :  { %670 = vmatpush.msrb.mxu3 %v1665_v10 }
 0x428   :  { %671 = vmatpush.msrb.mxu3 %v1668_v13 }
 0x42a   :  { %672 = vmatpush.msrb.mxu3 %v1671_v16 }
 0x42c   :  { %673 = vmatpush.msrb.mxu3 %v1674_v19 }
 0x42e   :  { %674 = vmatpush.msrb.mxu3 %v1677_v23 }
 0x430   :  { %675 = vmatpush.msrb.mxu3 %v1680_v25 }
 0x432   :  { %676 = vmatpush.msrb.mxu3 %v1683_v28 }
 0x496   :  { %v454_v5 = vpop.f32.mrf.mxu3 }
 0x497   :  { %v455_v27 = vadd.f32 %v454_v5, %v1809_v8 }
 0x499   :  { %v1349_v0 = vmul.f32 -1.442695, %v455_v27 }
 0x49e   :  { %v474_v31 = vpop.f32.mrf.mxu3 }
 0x49f   :  { %v475_v32 = vadd.f32 %v474_v31, %v178_v29 }
 0x4a1   :  { %v1350_v33 = vmul.f32 -1.442695, %v475_v32 }
 0x4a3   :  { %1423 = vpow2.f32 %v1350_v33 }
 0x4a9   :  { %v1424_v35 = vpop.eup %1423 }
 0x4aa   :  { %v484_v37 = vadd.f32 1.0, %v1424_v35 }
 0x4ac   :  { %1425 = vrcp.f32 %v484_v37  ;;  %v511_v56 = vand.u32 2147483648, %v484_v37  ;;  %v509_v58 = vand.u32 2147483647, %v484_v37  ;;  %vm505_vm2 = vweird.f32 %v484_v37 }
 0x4ad   :  { %1427 = vpow2.f32 %v1349_v0 }
 0x4ae   :  { %v512_v8 = vor.u32 1.1754944e-38, %v511_v56  ;;  %vm510_vm4 = vcmp.eq.f32.partialorder %v509_v58, 8.507059e+37 }
 0x4b2   :  { %v1426_v39 = vpop.eup %1425 }
 0x4b3   :  { %v501_v40 = vmul.f32 %v1426_v39, %v484_v37  ;;  %vm506_vm1 = vweird.f32 %v1426_v39  ;;  %v1428_v1 = vpop.eup %1427 }
 0x4b4   :  { %vm507_vm3 = vmor %vm505_vm2, %vm506_vm1  ;;  %v483_v2 = vadd.f32 1.0, %v1428_v1 }
 0x4b5   :  { %v502_v41 = vsub.f32 1.0, %v501_v40 }
 0x4b6   :  { %1429 = vrcp.f32 %v483_v2  ;;  %v496_v4 = vand.u32 2147483648, %v483_v2  ;;  %vm490_vm6 = vweird.f32 %v483_v2  ;;  %v494_v17 = vand.u32 2147483647, %v483_v2 }
 0x4b7   :  { %v503_v57 = vmul.f32 %v1426_v39, %v502_v41 }
 0x4b8   :  { %v497_v20 = vor.u32 1.1754944e-38, %v496_v4  ;;  %vm495_vm9 = vcmp.eq.f32.partialorder %v494_v17, 8.507059e+37  ;;  %v184_v17 = vadd.f32 %v1853_v44, %v1804_v59 }
 0x4b9   :  { %v504_v60 = vadd.f32 %v1426_v39, %v503_v57 }
 0x4bb   :  { %v508_v62 = vsel %vm507_vm3, %v1426_v39, %v504_v60 }
 0x4bc   :  { %v513_v42 = vsel %vm510_vm4, %v512_v8, %v508_v62  ;;  %v1430_v3 = vpop.eup %1429 }
 0x4bd   :  { %v515_v63 = vmul.f32 2.0, %v513_v42  ;;  %v486_v6 = vmul.f32 %v1430_v3, %v483_v2  ;;  %vm491_vm5 = vweird.f32 %v1430_v3 }
 0x4be   :  { %vm492_vm7 = vmor %vm490_vm6, %vm491_vm5 }
 0x4bf   :  { %v1351_v61 = vadd.f32 -1.0, %v515_v63  ;;  %v487_v7 = vsub.f32 1.0, %v486_v6 }
 0x4c1   :  { %519 = vrot.lane.b32.xlu0 %v1351_v61, %s1600_s3  ;;  %v488_v12 = vmul.f32 %v1430_v3, %v487_v7 }
 0x4c3   :  { %v489_v14 = vadd.f32 %v1430_v3, %v488_v12 }
 0x4c5   :  { %v493_v18 = vsel %vm492_vm7, %v1430_v3, %v489_v14 }
 0x4c6   :  { %v498_v24 = vsel %vm495_vm9, %v497_v20, %v493_v18 }
 0x4c7   :  { %v517_v27 = vmul.f32 %v498_v24, %v1864_v21 }
 0x533   :  { %v520_v22 = vpop.permute.xlu0 %519 }
 0x534   :  { %v522_v5 = vmul.f32 %v520_v22, %v498_v24 }
 0x536   :  { %524 = vrot.lane.b32.xlu1 %v522_v5, %s1600_s3 }
 0x5a8   :  { %v525_v29 = vpop.permute.xlu1 %524 }
 0x5a9   :  { %v1895_v31 = vadd.f32 %v525_v29, %v517_v27 }
 0x5ab   :  { %1431 = vtanh.f32 %v1895_v31 }
 0x5b1   :  { %v1432_v32 = vpop.eup %1431 }
 0x5b2   :  { %530 = vrot.lane.b32.xlu2 %v1432_v32, %s1600_s3 }
 0x60c   :  { %v531_v33 = vpop.permute.xlu2 %530 }
 0x60d   :  { %v1899_v35 = vmul.f32 %v531_v33, %v513_v42 }
 0x60f   :  { %1352 = vmatmul.msk.f32.vlgmr.msra.gmra.mxu2 %vm229_vm8, %v1899_v35  ;;  %1353 = vmatmul.msk.f32.vlgmr.msra.gmra.mxu3 %vm229_vm8, %v1899_v35 }
 0x610   :  { %853 = vmatpush.msra.mxu2 %v1705_v45  ;;  %873 = vmatpush.msra.mxu3 %v1663_v9  ;;  %v181_v9 = vadd.f32 %v1851_v43, %v1804_v59 }
 0x612   :  { %854 = vmatpush.msra.mxu2 %v1707_v46  ;;  %874 = vmatpush.msra.mxu3 %v1665_v10 }
 0x614   :  { %855 = vmatpush.msra.mxu2 %v1711_v47  ;;  %875 = vmatpush.msra.mxu3 %v1668_v13 }
 0x616   :  { %856 = vmatpush.msra.mxu2 %v1717_v48  ;;  %876 = vmatpush.msra.mxu3 %v1671_v16 }
 0x618   :  { %857 = vmatpush.msra.mxu2 %v1730_v50  ;;  %877 = vmatpush.msra.mxu3 %v1674_v19 }
 0x61a   :  { %858 = vmatpush.msra.mxu2 %v1732_v51  ;;  %878 = vmatpush.msra.mxu3 %v1677_v23 }
 0x61c   :  { %859 = vmatpush.msra.mxu2 %v1736_v52  ;;  %879 = vmatpush.msra.mxu3 %v1680_v25 }
 0x61e   :  { %860 = vmatpush.msra.mxu2 %v1742_v53  ;;  %880 = vmatpush.msra.mxu3 %v1683_v28 }
 0x692   :  { %v576_v10 = vpop.f32.mrf.mxu3  ;;  %v556_v37 = vpop.f32.mrf.mxu2 }
 0x693   :  { %v577_v13 = vadd.f32 %v576_v10, %v181_v9  ;;  %v557_v39 = vadd.f32 %v556_v37, %v1811_v15 }
 0x695   :  { %v1355_v16 = vmul.f32 -1.442695, %v577_v13  ;;  %v1354_v40 = vmul.f32 -1.442695, %v557_v39 }
 0x697   :  { %1433 = vpow2.f32 %v1355_v16 }
 0x69d   :  { %v1434_v19 = vpop.eup %1433 }
 0x69e   :  { %v586_v45 = vadd.f32 1.0, %v1434_v19 }
 0x6a0   :  { %1435 = vrcp.f32 %v586_v45  ;;  %v613_v48 = vand.u32 2147483648, %v586_v45  ;;  %v611_v25 = vand.u32 2147483647, %v586_v45  ;;  %vm607_vm11 = vweird.f32 %v586_v45 }
 0x6a1   :  { %1437 = vpow2.f32 %v1354_v40 }
 0x6a2   :  { %v614_v28 = vor.u32 1.1754944e-38, %v613_v48  ;;  %vm612_vm13 = vcmp.eq.f32.partialorder %v611_v25, 8.507059e+37 }
 0x6a6   :  { %v1436_v46 = vpop.eup %1435 }
 0x6a7   :  { %v603_v23 = vmul.f32 %v1436_v46, %v586_v45  ;;  %vm608_vm10 = vweird.f32 %v1436_v46  ;;  %v1438_v41 = vpop.eup %1437 }
 0x6a8   :  { %vm609_vm12 = vmor %vm607_vm11, %vm608_vm10  ;;  %v585_v56 = vadd.f32 1.0, %v1438_v41 }
 0x6a9   :  { %v604_v47 = vsub.f32 1.0, %v603_v23 }
 0x6aa   :  { %1439 = vrcp.f32 %v585_v56  ;;  %v598_v42 = vand.u32 2147483648, %v585_v56  ;;  %vm592_vm15 = vweird.f32 %v585_v56  ;;  %v596_v63 = vand.u32 2147483647, %v585_v56 }
 0x6ab   :  { %v605_v50 = vmul.f32 %v1436_v46, %v604_v47 }
 0x6ac   :  { %v599_v0 = vor.u32 1.1754944e-38, %v598_v42  ;;  %vm597_vm1 = vcmp.eq.f32.partialorder %v596_v63, 8.507059e+37  ;;  %v187_v42 = vadd.f32 %v1855_v49, %v1804_v59 }
 0x6ad   :  { %v606_v51 = vadd.f32 %v1436_v46, %v605_v50 }
 0x6af   :  { %v610_v52 = vsel %vm609_vm12, %v1436_v46, %v606_v51 }
 0x6b0   :  { %v615_v53 = vsel %vm612_vm13, %v614_v28, %v610_v52  ;;  %v1440_v57 = vpop.eup %1439 }
 0x6b1   :  { %v617_v43 = vmul.f32 2.0, %v615_v53  ;;  %v588_v58 = vmul.f32 %v1440_v57, %v585_v56  ;;  %vm593_vm14 = vweird.f32 %v1440_v57 }
 0x6b2   :  { %vm594_vm0 = vmor %vm592_vm15, %vm593_vm14 }
 0x6b3   :  { %v1356_v21 = vadd.f32 -1.0, %v617_v43  ;;  %v589_v60 = vsub.f32 1.0, %v588_v58 }
 0x6b5   :  { %621 = vrot.lane.b32.xlu0 %v1356_v21, %s1600_s3  ;;  %v590_v8 = vmul.f32 %v1440_v57, %v589_v60 }
 0x6b7   :  { %v591_v62 = vadd.f32 %v1440_v57, %v590_v8 }
 0x6b9   :  { %v595_v61 = vsel %vm594_vm0, %v1440_v57, %v591_v62 }
 0x6ba   :  { %v600_v15 = vsel %vm597_vm1, %v599_v0, %v595_v61 }
 0x6bb   :  { %v619_v3 = vmul.f32 %v600_v15, %v1895_v31 }
 0x727   :  { %v622_v1 = vpop.permute.xlu0 %621 }
 0x728   :  { %v624_v2 = vmul.f32 %v622_v1, %v600_v15 }
 0x72a   :  { %626 = vrot.lane.b32.xlu1 %v624_v2, %s1600_s3 }
 0x79c   :  { %v627_v6 = vpop.permute.xlu1 %626 }
 0x79d   :  { %v629_v7 = vadd.f32 %v627_v6, %v619_v3 }
 0x79f   :  { %1441 = vtanh.f32 %v629_v7 }
 0x7a5   :  { %v1442_v12 = vpop.eup %1441 }
 0x7a6   :  { %632 = vrot.lane.b32.xlu2 %v1442_v12, %s1600_s3 }
 0x800   :  { %v633_v14 = vpop.permute.xlu2 %632 }
 0x801   :  { %v1928_v4 = vmul.f32 %v633_v14, %v615_v53 }
 0x803   :  { %1357 = vmatmul.msk.f32.vlgmr.msrb.gmra.mxu2 %vm229_vm8, %v1928_v4  ;;  %1358 = vmatmul.msk.f32.vlgmr.msrb.gmra.mxu3 %vm229_vm8, %v1928_v4 }
 0x886   :  { %v678_v18 = vpop.f32.mrf.mxu3  ;;  %v658_v46 = vpop.f32.mrf.mxu2 }
 0x887   :  { %v679_v20 = vadd.f32 %v678_v18, %v184_v17  ;;  %v659_v23 = vadd.f32 %v658_v46, %v1813_v30 }
 0x889   :  { %v1360_v22 = vmul.f32 -1.442695, %v679_v20  ;;  %v1359_v47 = vmul.f32 -1.442695, %v659_v23 }
 0x88b   :  { %1443 = vpow2.f32 %v1360_v22 }
 0x891   :  { %v1444_v24 = vpop.eup %1443 }
 0x892   :  { %v688_v5 = vadd.f32 1.0, %v1444_v24 }
 0x894   :  { %1445 = vrcp.f32 %v688_v5  ;;  %v715_v32 = vand.u32 2147483648, %v688_v5  ;;  %v713_v9 = vand.u32 2147483647, %v688_v5  ;;  %vm709_vm3 = vweird.f32 %v688_v5 }
 0x895   :  { %1447 = vpow2.f32 %v1359_v47 }
 0x896   :  { %v716_v13 = vor.u32 1.1754944e-38, %v715_v32  ;;  %vm714_vm5 = vcmp.eq.f32.partialorder %v713_v9, 8.507059e+37 }
 0x89a   :  { %v1446_v27 = vpop.eup %1445 }
 0x89b   :  { %v705_v29 = vmul.f32 %v1446_v27, %v688_v5  ;;  %vm710_vm2 = vweird.f32 %v1446_v27  ;;  %v1448_v48 = vpop.eup %1447 }
 0x89c   :  { %vm711_vm4 = vmor %vm709_vm3, %vm710_vm2  ;;  %v687_v50 = vadd.f32 1.0, %v1448_v48 }
 0x89d   :  { %v706_v31 = vsub.f32 1.0, %v705_v29 }
 0x89e   :  { %1449 = vrcp.f32 %v687_v50  ;;  %v700_v43 = vand.u32 2147483648, %v687_v50  ;;  %vm694_vm7 = vweird.f32 %v687_v50  ;;  %v698_v21 = vand.u32 2147483647, %v687_v50 }
 0x89f   :  { %v707_v33 = vmul.f32 %v1446_v27, %v706_v31 }
 0x8a0   :  { %v701_v39 = vor.u32 1.1754944e-38, %v700_v43  ;;  %vm699_vm10 = vcmp.eq.f32.partialorder %v698_v21, 8.507059e+37 }
 0x8a1   :  { %v708_v10 = vadd.f32 %v1446_v27, %v707_v33 }
 0x8a3   :  { %v712_v16 = vsel %vm711_vm4, %v1446_v27, %v708_v10 }
 0x8a4   :  { %v717_v44 = vsel %vm714_vm5, %v716_v13, %v712_v16  ;;  %v1450_v25 = vpop.eup %1449 }
 0x8a5   :  { %v719_v19 = vmul.f32 2.0, %v717_v44  ;;  %v690_v51 = vmul.f32 %v1450_v25, %v687_v50  ;;  %vm695_vm6 = vweird.f32 %v1450_v25 }
 0x8a6   :  { %vm696_vm9 = vmor %vm694_vm7, %vm695_vm6 }
 0x8a7   :  { %v1361_v45 = vadd.f32 -1.0, %v719_v19  ;;  %v691_v28 = vsub.f32 1.0, %v690_v51 }
 0x8a9   :  { %723 = vrot.lane.b32.xlu0 %v1361_v45, %s1600_s3  ;;  %v692_v52 = vmul.f32 %v1450_v25, %v691_v28 }
 0x8ab   :  { %v693_v53 = vadd.f32 %v1450_v25, %v692_v52 }
 0x8ad   :  { %v697_v37 = vsel %vm696_vm9, %v1450_v25, %v693_v53  ;;  %v190_v53 = vadd.f32 %v1857_v54, %v1804_v59 }
 0x8ae   :  { %v702_v30 = vsel %vm699_vm10, %v701_v39, %v697_v37 }
 0x8af   :  { %v721_v56 = vmul.f32 %v702_v30, %v629_v7 }
 0x91b   :  { %v724_v40 = vpop.permute.xlu0 %723 }
 0x91c   :  { %v726_v41 = vmul.f32 %v724_v40, %v702_v30 }
 0x91e   :  { %728 = vrot.lane.b32.xlu1 %v726_v41, %s1600_s3 }
 0x990   :  { %v729_v57 = vpop.permute.xlu1 %728 }
 0x991   :  { %v731_v58 = vadd.f32 %v729_v57, %v721_v56 }
 0x993   :  { %1451 = vtanh.f32 %v731_v58 }
 0x999   :  { %v1452_v60 = vpop.eup %1451 }
 0x99a   :  { %734 = vrot.lane.b32.xlu2 %v1452_v60, %s1600_s3 }
 0x9f4   :  { %v735_v8 = vpop.permute.xlu2 %734 }
 0x9f5   :  { %v1940_v62 = vmul.f32 %v735_v8, %v717_v44 }
 0x9f7   :  { %1362 = vmatmul.msk.f32.vlgmr.msra.gmra.mxu0 %vm229_vm8, %v1940_v62  ;;  %1363 = vmatmul.msk.f32.vlgmr.msra.gmra.mxu1 %vm229_vm8, %v1940_v62 }
 0xa74   :  { %v780_v63 = vpop.f32.mrf.mxu1  ;;  %v760_v5 = vpop.f32.mrf.mxu0 }
 0xa75   :  { %v781_v61 = vadd.f32 %v780_v63, %v187_v42  ;;  %v761_v27 = vadd.f32 %v760_v5, %v1816_v34 }
 0xa77   :  { %v1365_v0 = vmul.f32 -1.442695, %v781_v61  ;;  %v1364_v29 = vmul.f32 -1.442695, %v761_v27 }
 0xa79   :  { %1453 = vpow2.f32 %v1365_v0 }
 0xa7f   :  { %v1454_v1 = vpop.eup %1453 }
 0xa80   :  { %v790_v15 = vadd.f32 1.0, %v1454_v1 }
 0xa82   :  { %1455 = vrcp.f32 %v790_v15  ;;  %v817_v7 = vand.u32 2147483648, %v790_v15  ;;  %v815_v14 = vand.u32 2147483647, %v790_v15  ;;  %vm811_vm12 = vweird.f32 %v790_v15 }
 0xa83   :  { %1457 = vpow2.f32 %v1364_v29 }
 0xa84   :  { %v818_v18 = vor.u32 1.1754944e-38, %v817_v7  ;;  %vm816_vm14 = vcmp.eq.f32.partialorder %v815_v14, 8.507059e+37 }
 0xa88   :  { %v1456_v2 = vpop.eup %1455 }
 0xa89   :  { %v807_v3 = vmul.f32 %v1456_v2, %v790_v15  ;;  %vm812_vm11 = vweird.f32 %v1456_v2  ;;  %v1458_v31 = vpop.eup %1457 }
 0xa8a   :  { %vm813_vm13 = vmor %vm811_vm12, %vm812_vm11  ;;  %v789_v32 = vadd.f32 1.0, %v1458_v31 }
 0xa8b   :  { %v808_v6 = vsub.f32 1.0, %v807_v3 }
 0xa8c   :  { %1459 = vrcp.f32 %v789_v32  ;;  %v802_v44 = vand.u32 2147483648, %v789_v32  ;;  %vm796_vm0 = vweird.f32 %v789_v32  ;;  %v800_v19 = vand.u32 2147483647, %v789_v32 }
 0xa8d   :  { %v809_v12 = vmul.f32 %v1456_v2, %v808_v6 }
 0xa8e   :  { %v803_v46 = vor.u32 1.1754944e-38, %v802_v44  ;;  %vm801_vm2 = vcmp.eq.f32.partialorder %v800_v19, 8.507059e+37 }
 0xa8f   :  { %v810_v17 = vadd.f32 %v1456_v2, %v809_v12 }
 0xa91   :  { %v814_v20 = vsel %vm813_vm13, %v1456_v2, %v810_v17 }
 0xa92   :  { %v819_v49 = vsel %vm816_vm14, %v818_v18, %v814_v20  ;;  %v1460_v33 = vpop.eup %1459 }
 0xa93   :  { %v821_v22 = vmul.f32 2.0, %v819_v49  ;;  %v792_v9 = vmul.f32 %v1460_v33, %v789_v32  ;;  %vm797_vm15 = vweird.f32 %v1460_v33 }
 0xa94   :  { %vm798_vm1 = vmor %vm796_vm0, %vm797_vm15 }
 0xa95   :  { %v1366_v24 = vadd.f32 -1.0, %v821_v22  ;;  %v793_v10 = vsub.f32 1.0, %v792_v9 }
 0xa97   :  { %825 = vrot.lane.b32.xlu0 %v1366_v24, %s1600_s3  ;;  %v794_v13 = vmul.f32 %v1460_v33, %v793_v10 }
 0xa99   :  { %v795_v16 = vadd.f32 %v1460_v33, %v794_v13  ;;  %v193_v13 = vadd.f32 %v1859_v55, %v1804_v59 }
 0xa9b   :  { %v799_v45 = vsel %vm798_vm1, %v1460_v33, %v795_v16 }
 0xa9c   :  { %v804_v34 = vsel %vm801_vm2, %v803_v46, %v799_v45 }
 0xa9d   :  { %v823_v48 = vmul.f32 %v804_v34, %v731_v58 }
 0xb09   :  { %v826_v23 = vpop.permute.xlu0 %825 }
 0xb0a   :  { %v828_v47 = vmul.f32 %v826_v23, %v804_v34 }
 0xb0c   :  { %830 = vrot.lane.b32.xlu1 %v828_v47, %s1600_s3 }
 0xb7e   :  { %v831_v50 = vpop.permute.xlu1 %830 }
 0xb7f   :  { %v833_v25 = vadd.f32 %v831_v50, %v823_v48 }
 0xb81   :  { %1461 = vtanh.f32 %v833_v25 }
 0xb87   :  { %v1462_v51 = vpop.eup %1461 }
 0xb88   :  { %836 = vrot.lane.b32.xlu2 %v1462_v51, %s1600_s3 }
 0xbe2   :  { %v837_v28 = vpop.permute.xlu2 %836 }
 0xbe3   :  { %v1952_v52 = vmul.f32 %v837_v28, %v819_v49 }
 0xbe5   :  { %1367 = vmatmul.msk.f32.vlgmr.msra.gmra.mxu2 %vm229_vm8, %v1952_v52  ;;  %1368 = vmatmul.msk.f32.vlgmr.msra.gmra.mxu3 %vm229_vm8, %v1952_v52 }
 0xc68   :  { %v882_v43 = vpop.f32.mrf.mxu3  ;;  %v862_v1 = vpop.f32.mrf.mxu2 }
 0xc69   :  { %v883_v21 = vadd.f32 %v882_v43, %v190_v53  ;;  %v863_v15 = vadd.f32 %v862_v1, %v1818_v36  ;;  %v1060_v1 = vld [vmem:[%s2099_s4 + $0x38] sm:$0xff] }
 0xc6a   :  { %1097 = vmatpush.msrb.mxu2 %v1060_v1 }
 0xc6b   :  { %v1370_v37 = vmul.f32 -1.442695, %v883_v21  ;;  %v1369_v2 = vmul.f32 -1.442695, %v863_v15  ;;  %v1059_v15 = vld [vmem:[%s2099_s4 + $0x30] sm:$0xff] }
 0xc6c   :  { %1098 = vmatpush.msrb.mxu2 %v1059_v15 }
 0xc6d   :  { %1463 = vpow2.f32 %v1370_v37 }
 0xc73   :  { %v1464_v39 = vpop.eup %1463 }
 0xc74   :  { %v892_v40 = vadd.f32 1.0, %v1464_v39 }
 0xc76   :  { %1465 = vrcp.f32 %v892_v40  ;;  %v919_v57 = vand.u32 2147483648, %v892_v40  ;;  %v917_v60 = vand.u32 2147483647, %v892_v40  ;;  %vm913_vm4 = vweird.f32 %v892_v40 }
 0xc77   :  { %1467 = vpow2.f32 %v1369_v2  ;;  %v1058_v2 = vld [vmem:[%s2099_s4 + $0x28] sm:$0xff] }
 0xc78   :  { %v920_v42 = vor.u32 1.1754944e-38, %v919_v57  ;;  %vm918_vm6 = vcmp.eq.f32.partialorder %v917_v60, 8.507059e+37  ;;  %1099 = vmatpush.msrb.mxu2 %v1058_v2 }
 0xc7c   :  { %v1466_v30 = vpop.eup %1465 }
 0xc7d   :  { %v909_v41 = vmul.f32 %v1466_v30, %v892_v40  ;;  %vm914_vm3 = vweird.f32 %v1466_v30  ;;  %v1468_v3 = vpop.eup %1467 }
 0xc7e   :  { %vm915_vm5 = vmor %vm913_vm4, %vm914_vm3  ;;  %v891_v6 = vadd.f32 1.0, %v1468_v3  ;;  %v1057_v3 = vld [vmem:[%s2099_s4 + $0x20] sm:$0xff]  ;;  %vm1044_vm4 = vcmask 261120  }
 0xc7f   :  { %v910_v56 = vsub.f32 1.0, %v909_v41  ;;  %1100 = vmatpush.msrb.mxu2 %v1057_v3 }
 0xc80   :  { %1469 = vrcp.f32 %v891_v6  ;;  %v904_v20 = vand.u32 2147483648, %v891_v6  ;;  %vm898_vm9 = vweird.f32 %v891_v6  ;;  %v902_v49 = vand.u32 2147483647, %v891_v6 }
 0xc81   :  { %v911_v58 = vmul.f32 %v1466_v30, %v910_v56 }
 0xc82   :  { %v905_v24 = vor.u32 1.1754944e-38, %v904_v20  ;;  %vm903_vm11 = vcmp.eq.f32.partialorder %v902_v49, 8.507059e+37  ;;  %v1054_v20 = vld [vmem:[%s2099_s4 + $0x8] sm:$0xff]  ;;  %v1053_v49 = vld [vmem:[%s2099_s4] sm:$0xff] }
 0xc83   :  { %v912_v8 = vadd.f32 %v1466_v30, %v911_v58 }
 0xc85   :  { %v916_v63 = vsel %vm915_vm5, %v1466_v30, %v912_v8  ;;  %vm1186_vm5 = vcmask 7168  }
 0xc86   :  { %v921_v54 = vsel %vm918_vm6, %v920_v42, %v916_v63  ;;  %v1470_v7 = vpop.eup %1469  ;;  %vm1319_vm6 = vcmask 517120  }
 0xc87   :  { %v923_v61 = vmul.f32 2.0, %v921_v54  ;;  %v894_v12 = vmul.f32 %v1470_v7, %v891_v6  ;;  %vm899_vm7 = vweird.f32 %v1470_v7  ;;  %v1056_v6 = vld [vmem:[%s2099_s4 + $0x18] sm:$0xff] }
 0xc88   :  { %vm900_vm10 = vmor %vm898_vm9, %vm899_vm7  ;;  %1101 = vmatpush.msrb.mxu2 %v1056_v6 }
 0xc89   :  { %v1371_v0 = vadd.f32 -1.0, %v923_v61  ;;  %v895_v14 = vsub.f32 1.0, %v894_v12 }
 0xc8b   :  { %927 = vrot.lane.b32.xlu0 %v1371_v0, %s1600_s3  ;;  %v896_v17 = vmul.f32 %v1470_v7, %v895_v14 }
 0xc8d   :  { %v897_v18 = vadd.f32 %v1470_v7, %v896_v17 }
 0xc8f   :  { %v901_v22 = vsel %vm900_vm10, %v1470_v7, %v897_v18  ;;  %v1055_v7 = vld [vmem:[%s2099_s4 + $0x10] sm:$0xff] }
 0xc90   :  { %v906_v36 = vsel %vm903_vm11, %v905_v24, %v901_v22  ;;  %1102 = vmatpush.msrb.mxu2 %v1055_v7 }
 0xc91   :  { %v925_v29 = vmul.f32 %v906_v36, %v833_v25 }
 0xc92   :  { %1103 = vmatpush.msrb.mxu2 %v1054_v20 }
 0xc94   :  { %1104 = vmatpush.msrb.mxu2 %v1053_v49 }
 0xcfd   :  { %v928_v5 = vpop.permute.xlu0 %927 }
 0xcfe   :  { %v930_v27 = vmul.f32 %v928_v5, %v906_v36 }
 0xd00   :  { %932 = vrot.lane.b32.xlu1 %v930_v27, %s1600_s3  ;;  %v2020_v27 = vsel %vm1044_vm4, %v1899_v35, %v1952_v52 }
 0xd72   :  { %v933_v31 = vpop.permute.xlu1 %932 }
 0xd73   :  { %v1963_v32 = vadd.f32 %v933_v31, %v925_v29  ;;  %v2027_v29 = vsel %vm1044_vm4, %v1928_v4, %v1940_v62  ;;  %v2034_v31 = vsel %vm1044_vm4, %v1940_v62, %v1928_v4 }
 0xd75   :  { %1471 = vtanh.f32 %v1963_v32 }
 0xd7b   :  { %v1472_v33 = vpop.eup %1471 }
 0xd7c   :  { %938 = vrot.lane.b32.xlu2 %v1472_v33, %s1600_s3 }
 0xdd6   :  { %v939_v9 = vpop.permute.xlu2 %938 }
 0xdd7   :  { %v1967_v10 = vmul.f32 %v939_v9, %v921_v54 }
 0xdd9   :  { %1372 = vmatmul.msk.f32.vlgmr.msrb.gmra.mxu0 %vm229_vm8, %v1967_v10  ;;  %1373 = vmatmul.msk.f32.vlgmr.msrb.gmra.mxu1 %vm229_vm8, %v1967_v10  ;;  %v2013_v36 = vsel %vm1044_vm4, %v1868_v26, %v1967_v10  ;;  %v2048_v33 = vsel %vm1044_vm4, %v1967_v10, %v1868_v26  ;;  %v1401_v26 = vld [vmem:[%s2101_s6] ss:$0 sm:$0xff] }
 0xe56   :  { %v984_v16 = vpop.f32.mrf.mxu1  ;;  %v964_v21 = vpop.f32.mrf.mxu0 }
 0xe57   :  { %v985_v44 = vadd.f32 %v984_v16, %v193_v13  ;;  %v965_v37 = vadd.f32 %v964_v21, %v1820_v38 }
 0xe59   :  { %v1375_v19 = vmul.f32 -1.442695, %v985_v44  ;;  %v1374_v39 = vmul.f32 -1.442695, %v965_v37 }
 0xe5b   :  { %1473 = vpow2.f32 %v1375_v19 }
 0xe61   :  { %v1474_v45 = vpop.eup %1473 }
 0xe62   :  { %v994_v46 = vadd.f32 1.0, %v1474_v45 }
 0xe64   :  { %1475 = vrcp.f32 %v994_v46  ;;  %v1021_v48 = vand.u32 2147483648, %v994_v46  ;;  %v1019_v25 = vand.u32 2147483647, %v994_v46  ;;  %vm1015_vm13 = vweird.f32 %v994_v46 }
 0xe65   :  { %1477 = vpow2.f32 %v1374_v39 }
 0xe66   :  { %v1022_v28 = vor.u32 1.1754944e-38, %v1021_v48  ;;  %vm1020_vm15 = vcmp.eq.f32.partialorder %v1019_v25, 8.507059e+37 }
 0xe6a   :  { %v1476_v23 = vpop.eup %1475 }
 0xe6b   :  { %v1011_v34 = vmul.f32 %v1476_v23, %v994_v46  ;;  %vm1016_vm12 = vweird.f32 %v1476_v23  ;;  %v1478_v40 = vpop.eup %1477 }
 0xe6c   :  { %vm1017_vm14 = vmor %vm1015_vm13, %vm1016_vm12  ;;  %v993_v30 = vadd.f32 1.0, %v1478_v40 }
 0xe6d   :  { %v1012_v47 = vsub.f32 1.0, %v1011_v34 }
 0xe6e   :  { %1479 = vrcp.f32 %v993_v30  ;;  %v1006_v8 = vand.u32 2147483648, %v993_v30  ;;  %vm1000_vm1 = vweird.f32 %v993_v30  ;;  %v1004_v42 = vand.u32 2147483647, %v993_v30 }
 0xe6f   :  { %v1013_v50 = vmul.f32 %v1476_v23, %v1012_v47 }
 0xe70   :  { %v1007_v54 = vor.u32 1.1754944e-38, %v1006_v8  ;;  %vm1005_vm3 = vcmp.eq.f32.partialorder %v1004_v42, 8.507059e+37 }
 0xe71   :  { %v1014_v51 = vadd.f32 %v1476_v23, %v1013_v50 }
 0xe73   :  { %v1018_v53 = vsel %vm1017_vm14, %v1476_v23, %v1014_v51 }
 0xe74   :  { %v1023_v59 = vsel %vm1020_vm15, %v1022_v28, %v1018_v53  ;;  %v1480_v41 = vpop.eup %1479 }
 0xe75   :  { %v1025_v55 = vmul.f32 2.0, %v1023_v59  ;;  %v996_v56 = vmul.f32 %v1480_v41, %v993_v30  ;;  %vm1001_vm0 = vweird.f32 %v1480_v41 }
 0xe76   :  { %vm1002_vm2 = vmor %vm1000_vm1, %vm1001_vm0 }
 0xe77   :  { %v1376_v43 = vadd.f32 -1.0, %v1025_v55  ;;  %v997_v57 = vsub.f32 1.0, %v996_v56 }
 0xe79   :  { %1029 = vrot.lane.b32.xlu0 %v1376_v43, %s1600_s3  ;;  %v998_v58 = vmul.f32 %v1480_v41, %v997_v57 }
 0xe7b   :  { %v999_v60 = vadd.f32 %v1480_v41, %v998_v58 }
 0xe7d   :  { %v1003_v63 = vsel %vm1002_vm2, %v1480_v41, %v999_v60 }
 0xe7e   :  { %v1008_v38 = vsel %vm1005_vm3, %v1007_v54, %v1003_v63 }
 0xe7f   :  { %v1027_v12 = vmul.f32 %v1008_v38, %v1963_v32  ;;  %v2041_v32 = vsel %vm1044_vm4, %v1952_v52, %v1899_v35  ;;  %v1400_v35 = vld [vmem:[%s2100_s5] ss:$0 sm:$0xff] }
 0xeeb   :  { %v1030_v61 = vpop.permute.xlu0 %1029 }
 0xeec   :  { %v1032_v0 = vmul.f32 %v1030_v61, %v1008_v38 }
 0xeee   :  { %1034 = vrot.lane.b32.xlu1 %v1032_v0, %s1600_s3 }
 0xf60   :  { %v1035_v14 = vpop.permute.xlu1 %1034 }
 0xf61   :  { %v1037_v17 = vadd.f32 %v1035_v14, %v1027_v12  ;;  %v1402_v12 = vld [vmem:[#allocation3] ss:$0 sm:$0xff] }
 0xf63   :  { %1481 = vtanh.f32 %v1037_v17 }
 0xf69   :  { %v1482_v18 = vpop.eup %1481 }
 0xf6a   :  { %1040 = vrot.lane.b32.xlu2 %v1482_v18, %s1600_s3  ;;  %v1601_v18 = vmov 0  }
 0xf6b   :  { %1397 = vset.pattern.permute.xlu0 %v1601_v18  ;;  %1396 = vset.pattern.permute.xlu2 %v1601_v18 }
 0xf6c   :  { %1395 = vset.pattern.permute.xlu1 %v1601_v18 }
 0xfc4   :  { %v1041_v22 = vpop.permute.xlu2 %1040 }
 0xfc5   :  { %v1043_v24 = vmul.f32 %v1041_v22, %v1023_v59 }
 0xfc7   :  { %v2006_v5 = vsel %vm1044_vm4, %v1827_v11, %v1043_v24  ;;  %v2054_v4 = vsel %vm1044_vm4, %v1043_v24, %v1827_v11 }
 0xfc8   :  { %1377 = vmatmul.msk.f32.vlgmr.msrb.gmra.mxu2 %vm229_vm8, %v2006_v5 }
 0xfd0   :  { %1378 = vmatmul.msk.f32.gmra.mxu2 %vm229_vm8, %v2013_v36 }
 0xfd8   :  { %1379 = vmatmul.msk.f32.gmra.mxu2 %vm229_vm8, %v2020_v27 }
 0xfe0   :  { %1380 = vmatmul.msk.f32.gmra.mxu2 %vm229_vm8, %v2027_v29 }
 0xfe8   :  { %1381 = vmatmul.msk.f32.gmra.mxu2 %vm229_vm8, %v2034_v31 }
 0xff0   :  { %1382 = vmatmul.msk.f32.gmra.mxu2 %vm229_vm8, %v2041_v32 }
 0xff8   :  { %1383 = vmatmul.msk.f32.gmra.mxu2 %vm229_vm8, %v2048_v33 }
0x1000   :  { %1384 = vmatmul.msk.f32.gmra.mxu2 %vm229_vm8, %v2054_v4 }
0x104b   :  { %v1106_v62 = vpop.f32.mrf.mxu2 }
0x104c   :  { %v1107_v52 = vadd.f32 %v1400_v35, %v1106_v62 }
0x104e   :  { %1483 = vtanh.f32 %v1107_v52 }
0x1053   :  { %v1109_v9 = vpop.f32.mrf.mxu2 }
0x1054   :  { %v1484_v10 = vpop.eup %1483  ;;  %v1110_v13 = vadd.f32 %v1400_v35, %v1109_v9 }
0x1055   :  { %v1142_v16 = vmul.f32 %v1484_v10, %v1401_v26 }
0x1056   :  { %1485 = vtanh.f32 %v1110_v13 }
0x1057   :  { %v1150_v11 = vsel %vm1044_vm4, %v1142_v16, 0.0 }
0x1058   :  { %1151 = vadd.xlane.f32.xlu0 %v1150_v11 }
0x105b   :  { %v1112_v44 = vpop.f32.mrf.mxu2 }
0x105c   :  { %v1486_v19 = vpop.eup %1485  ;;  %v1113_v45 = vadd.f32 %v1400_v35, %v1112_v44 }
0x105d   :  { %v1143_v46 = vmul.f32 %v1486_v19, %v1401_v26 }
0x105e   :  { %1487 = vtanh.f32 %v1113_v45 }
0x105f   :  { %v1153_v23 = vsel %vm1044_vm4, %v1143_v46, 0.0 }
0x1060   :  { %1154 = vadd.xlane.f32.xlu1 %v1153_v23 }
0x1063   :  { %v1115_v34 = vpop.f32.mrf.mxu2 }
0x1064   :  { %v1488_v47 = vpop.eup %1487  ;;  %v1116_v48 = vadd.f32 %v1400_v35, %v1115_v34 }
0x1065   :  { %v1144_v50 = vmul.f32 %v1488_v47, %v1401_v26 }
0x1066   :  { %1489 = vtanh.f32 %v1116_v48 }
0x1067   :  { %v1156_v25 = vsel %vm1044_vm4, %v1144_v50, 0.0 }
0x1068   :  { %1157 = vadd.xlane.f32.xlu2 %v1156_v25 }
0x106b   :  { %v1118_v51 = vpop.f32.mrf.mxu2 }
0x106c   :  { %v1490_v28 = vpop.eup %1489  ;;  %v1119_v53 = vadd.f32 %v1400_v35, %v1118_v51 }
0x106d   :  { %v1145_v59 = vmul.f32 %v1490_v28, %v1401_v26 }
0x106e   :  { %1491 = vtanh.f32 %v1119_v53 }
0x106f   :  { %v1159_v55 = vsel %vm1044_vm4, %v1145_v59, 0.0 }
0x1070   :  { %1160 = vadd.xlane.f32.xlu2 %v1159_v55 }
0x1073   :  { %v1121_v43 = vpop.f32.mrf.mxu2 }
0x1074   :  { %v1492_v21 = vpop.eup %1491  ;;  %v1122_v37 = vadd.f32 %v1400_v35, %v1121_v43 }
0x1075   :  { %v1146_v39 = vmul.f32 %v1492_v21, %v1401_v26 }
0x1076   :  { %1493 = vtanh.f32 %v1122_v37 }
0x1077   :  { %v1162_v40 = vsel %vm1044_vm4, %v1146_v39, 0.0 }
0x1078   :  { %1163 = vadd.xlane.f32.xlu0 %v1162_v40 }
0x107b   :  { %v1124_v30 = vpop.f32.mrf.mxu2 }
0x107c   :  { %v1494_v41 = vpop.eup %1493  ;;  %v1125_v56 = vadd.f32 %v1400_v35, %v1124_v30 }
0x107d   :  { %v1147_v57 = vmul.f32 %v1494_v41, %v1401_v26 }
0x107e   :  { %1495 = vtanh.f32 %v1125_v56 }
0x107f   :  { %v1165_v58 = vsel %vm1044_vm4, %v1147_v57, 0.0 }
0x1080   :  { %1166 = vadd.xlane.f32.xlu1 %v1165_v58 }
0x1083   :  { %v1127_v60 = vpop.f32.mrf.mxu2 }
0x1084   :  { %v1496_v8 = vpop.eup %1495  ;;  %v1128_v42 = vadd.f32 %v1400_v35, %v1127_v60 }
0x1085   :  { %v1148_v63 = vmul.f32 %v1496_v8, %v1401_v26 }
0x1086   :  { %1497 = vtanh.f32 %v1128_v42 }
0x1087   :  { %v1168_v54 = vsel %vm1044_vm4, %v1148_v63, 0.0 }
0x1088   :  { %1169 = vadd.xlane.f32.xlu2 %v1168_v54 }
0x108c   :  { %v1498_v61 = vpop.eup %1497 }
0x108d   :  { %v1149_v38 = vmul.f32 %v1498_v61, %v1401_v26 }
0x108f   :  { %v1171_v0 = vsel %vm1044_vm4, %v1149_v38, 0.0 }
0x1090   :  { %1172 = vadd.xlane.f32.xlu0 %v1171_v0 }
0x10cb   :  { %v1152_v15 = vpop.xlane.xlu0 %1151 }
0x10cc   :  { %v1178_v24 = vadd.f32 %v1402_v12, %v1152_v15 }
0x10ce   :  { %v1187_v44 = vsel %vm1186_vm5, %v1178_v24, -inf }
0x10d3   :  { %v1155_v2 = vpop.xlane.xlu1 %1154 }
0x10d4   :  { %v1179_v20 = vadd.f32 %v1402_v12, %v1155_v2 }
0x10d6   :  { %v1188_v9 = vsel %vm1186_vm5, %v1179_v20, -inf }
0x10db   :  { %v1158_v1 = vpop.xlane.xlu2 %1157 }
0x10dc   :  { %v1180_v35 = vadd.f32 %v1402_v12, %v1158_v1 }
0x10de   :  { %v1189_v19 = vsel %vm1186_vm5, %v1180_v35, -inf }
0x10e3   :  { %v1161_v3 = vpop.xlane.xlu2 %1160 }
0x10e4   :  { %v1181_v62 = vadd.f32 %v1402_v12, %v1161_v3 }
0x10e6   :  { %v1190_v45 = vsel %vm1186_vm5, %v1181_v62, -inf }
0x10eb   :  { %v1164_v6 = vpop.xlane.xlu0 %1163 }
0x10ec   :  { %v1182_v49 = vadd.f32 %v1402_v12, %v1164_v6 }
0x10ee   :  { %v1191_v10 = vsel %vm1186_vm5, %v1182_v49, -inf }
0x10ef   :  { %v1192_v23 = vmax.f32 %v1187_v44, %v1191_v10 }
0x10f3   :  { %v1167_v7 = vpop.xlane.xlu1 %1166 }
0x10f4   :  { %v1183_v17 = vadd.f32 %v1402_v12, %v1167_v7 }
0x10f6   :  { %v1193_v52 = vsel %vm1186_vm5, %v1183_v17, -inf }
0x10f7   :  { %v1194_v11 = vmax.f32 %v1188_v9, %v1193_v52 }
0x10f9   :  { %v1199_v48 = vmax.f32 %v1192_v23, %v1194_v11 }
0x10fb   :  { %v1170_v14 = vpop.xlane.xlu2 %1169 }
0x10fc   :  { %v1184_v22 = vadd.f32 %v1402_v12, %v1170_v14 }
0x10fe   :  { %v1195_v13 = vsel %vm1186_vm5, %v1184_v22, -inf }
0x10ff   :  { %v1196_v34 = vmax.f32 %v1189_v19, %v1195_v13 }
0x1103   :  { %v1173_v26 = vpop.xlane.xlu0 %1172 }
0x1104   :  { %v1185_v16 = vadd.f32 %v1402_v12, %v1173_v26 }
0x1106   :  { %v1197_v46 = vsel %vm1186_vm5, %v1185_v16, -inf }
0x1107   :  { %v1198_v47 = vmax.f32 %v1190_v45, %v1197_v46  ;;  %v1288_v45 = vld [vmem:[%s2103_s8] sm:$0x3] }
0x1109   :  { %v1200_v50 = vmax.f32 %v1196_v34, %v1198_v47 }
0x110b   :  { %v1201_v25 = vmax.f32 %v1199_v48, %v1200_v50 }
0x110d   :  { %v1202_v51 = vrot.slane %v1201_v25, 4 }
0x110f   :  { %v1203_v28 = vmax.f32 %v1201_v25, %v1202_v51 }
0x1111   :  { %v1204_v53 = vrot.slane %v1203_v28, 2 }
0x1113   :  { %v1205_v59 = vmax.f32 %v1203_v28, %v1204_v53 }
0x1115   :  { %v1206_v55 = vrot.slane %v1205_v59, 1 }
0x1117   :  { %v1207_v43 = vmax.f32 %v1205_v59, %v1206_v55 }
0x1119   :  { %v1215_v21 = vsub.f32 %v1185_v16, %v1207_v43  ;;  %v1214_v37 = vsub.f32 %v1184_v22, %v1207_v43  ;;  %v1213_v39 = vsub.f32 %v1183_v17, %v1207_v43  ;;  %v1212_v56 = vsub.f32 %v1182_v49, %v1207_v43 }
0x111a   :  { %v1211_v57 = vsub.f32 %v1181_v62, %v1207_v43  ;;  %v1210_v54 = vsub.f32 %v1180_v35, %v1207_v43  ;;  %v1209_v61 = vsub.f32 %v1179_v20, %v1207_v43  ;;  %v1208_v2 = vsub.f32 %v1178_v24, %v1207_v43 }
0x111b   :  { %v1230_v40 = vmul.f32 1.442695, %v1215_v21  ;;  %v1228_v30 = vmul.f32 1.442695, %v1214_v37  ;;  %v1226_v41 = vmul.f32 1.442695, %v1213_v39 }
0x111c   :  { %v1224_v58 = vmul.f32 1.442695, %v1212_v56  ;;  %v1222_v60 = vmul.f32 1.442695, %v1211_v57  ;;  %v1220_v38 = vmul.f32 1.442695, %v1210_v54 }
0x111d   :  { %1499 = vpow2.f32 %v1230_v40  ;;  %v1218_v0 = vmul.f32 1.442695, %v1209_v61  ;;  %v1216_v3 = vmul.f32 1.442695, %v1208_v2 }
0x111e   :  { %1501 = vpow2.f32 %v1228_v30 }
0x111f   :  { %1503 = vpow2.f32 %v1226_v41 }
0x1120   :  { %1505 = vpow2.f32 %v1224_v58 }
0x1121   :  { %1507 = vpow2.f32 %v1222_v60 }
0x1122   :  { %1509 = vpow2.f32 %v1220_v38 }
0x1123   :  { %v1500_v8 = vpop.eup %1499  ;;  %1511 = vpow2.f32 %v1218_v0 }
0x1124   :  { %v1502_v42 = vpop.eup %1501  ;;  %1269 = vperm.xlu1 %1395, %v1500_v8   ;;  %1513 = vpow2.f32 %v1216_v3 }
0x1125   :  { %v1504_v63 = vpop.eup %1503  ;;  %1264 = vperm.xlu2 %1396, %v1502_v42  }
0x1126   :  { %1259 = vperm.xlu0 %1397, %v1504_v63   ;;  %v1506_v1 = vpop.eup %1505 }
0x1127   :  { %v1508_v15 = vpop.eup %1507 }
0x1128   :  { %v1510_v6 = vpop.eup %1509 }
0x1129   :  { %v1512_v7 = vpop.eup %1511 }
0x112a   :  { %v1514_v12 = vpop.eup %1513 }
0x112c   :  { %1254 = vperm.xlu1 %1395, %v1506_v1  }
0x112d   :  { %1249 = vperm.xlu2 %1396, %v1508_v15  }
0x1134   :  { %1244 = vperm.xlu1 %1395, %v1510_v6  }
0x1135   :  { %1239 = vperm.xlu2 %1396, %v1512_v7  }
0x113c   :  { %1234 = vperm.xlu1 %1395, %v1514_v12  }
0x117f   :  { %v1265_v14 = vpop.permute.xlu2 %1264 }
0x1180   :  { %v1278_v18 = vmul.f32 %v1265_v14, %v2048_v33 }
0x1182   :  { %v1286_v62 = vsel %vm229_vm8, %v1278_v18, %v1265_v14 }
0x1187   :  { %v1250_v35 = vpop.permute.xlu2 %1249 }
0x1188   :  { %v1275_v9 = vmul.f32 %v1250_v35, %v2027_v29 }
0x118a   :  { %v1283_v10 = vsel %vm229_vm8, %v1275_v9, %v1250_v35 }
0x118f   :  { %v1240_v13 = vpop.permute.xlu2 %1239 }
0x1190   :  { %v1273_v16 = vmul.f32 %v1240_v13, %v2013_v36  ;;  %v1602_v36 = vmov 64  }
0x1191   :  { %1398 = vset.pattern.permute.xlu2 %v1602_v36  ;;  %1399 = vset.pattern.permute.xlu0 %v1602_v36 }
0x1192   :  { %v1281_v19 = vsel %vm229_vm8, %v1273_v16, %v1240_v13 }
0x1196   :  { %v1270_v17 = vpop.permute.xlu1 %1269 }
0x1197   :  { %v1279_v20 = vmul.f32 %v1270_v17, %v2054_v4 }
0x1198   :  { %v1260_v49 = vpop.permute.xlu0 %1259 }
0x1199   :  { %v1287_v22 = vsel %vm229_vm8, %v1279_v20, %v1270_v17  ;;  %v1277_v24 = vmul.f32 %v1260_v49, %v2041_v32 }
0x119a   :  { %1300 = vmatpush.msrb.mxu3 %v1287_v22 }
0x119b   :  { %v1285_v52 = vsel %vm229_vm8, %v1277_v24, %v1260_v49 }
0x119c   :  { %1301 = vmatpush.msrb.mxu3 %v1286_v62 }
0x119e   :  { %1302 = vmatpush.msrb.mxu3 %v1285_v52  ;;  %v1255_v26 = vpop.permute.xlu1 %1254 }
0x119f   :  { %v1276_v33 = vmul.f32 %v1255_v26, %v2034_v31 }
0x11a1   :  { %v1284_v4 = vsel %vm229_vm8, %v1276_v33, %v1255_v26 }
0x11a2   :  { %1303 = vmatpush.msrb.mxu3 %v1284_v4 }
0x11a4   :  { %1304 = vmatpush.msrb.mxu3 %v1283_v10 }
0x11a6   :  { %v1245_v32 = vpop.permute.xlu1 %1244 }
0x11a7   :  { %v1274_v11 = vmul.f32 %v1245_v32, %v2020_v27 }
0x11a9   :  { %v1282_v44 = vsel %vm229_vm8, %v1274_v11, %v1245_v32 }
0x11aa   :  { %1305 = vmatpush.msrb.mxu3 %v1282_v44 }
0x11ac   :  { %1306 = vmatpush.msrb.mxu3 %v1281_v19 }
0x11ae   :  { %v1235_v29 = vpop.permute.xlu1 %1234 }
0x11af   :  { %v1272_v31 = vmul.f32 %v1235_v29, %v2006_v5 }
0x11b1   :  { %v1280_v46 = vsel %vm229_vm8, %v1272_v31, %v1235_v29 }
0x11b2   :  { %1307 = vmatpush.msrb.mxu3 %v1280_v46 }
0x11b3   :  { %1385 = vmatmul.msk.f32.vlgmr.msrb.gmra.mxu3 %vm229_vm8, %v1288_v45 }
0x1236   :  { %v1309_v27 = vpop.f32.mrf.mxu3 }
0x1237   :  { %1515 = vrcp.f32 %v1309_v27 }
0x123d   :  { %v1516_v23 = vpop.eup %1515 }
0x123e   :  { %1315 = vperm.xlu2 %1398, %v1516_v23  }
0x1298   :  { %v1316_v5 = vpop.permute.xlu2 %1315 }
0x1299   :  { %v1318_v34 = vmul.f32 %v1316_v5, %v1309_v27 }
0x129b   :  { %1320 = vst.msk [vmem:[#allocation9] sm:$0x3] %vm1319_vm6, %v1318_v34 }
0x129c   :  { %1331 = dma.vmem_to_hbm [thread:$0]  %s1327_s12, 32, %s1329_s0, [#allocation6]  }
0x129d   :  { %1593 = dma.done.wait [#allocation6], 32  }
0x129e   :  { %1594 = vsyncadd [#allocation6], 4294967264 }
0x129f   :  { %1336 = vsyncpa [#allocation5], 1 }
0x12a0   :  { %1337 = vsyncpa [#allocation8], 1 }
0x12a1   :  { %1338 = vsyncpa [#allocation6], 1 }

</bundles_post_ra>
